<compile_context>
chip_gen: v7x
topology: tpu7x:2x2x1
jax: 0.10.0
libtpu: 0.0.40
codegen_flags: <defaults>
</compile_context>

<pallas_src>
import jax
import jax.numpy as jnp
from jax.experimental import pallas as pl
from jax.experimental.pallas import tpu as pltpu

MAX_EDGE_TILE = 1024          # big edge tiles (v5e/v6e roofline); >=2 blocks when possible
MAX_NODE_TILE = 512
MM_DTYPE = jnp.bfloat16       # MXU operand dtype (accumulate in f32)


# --------------------------------------------------------------------------
# small helpers
# --------------------------------------------------------------------------
def _round_up(n, m):
    return ((n + m - 1) // m) * m


def _row_tiling(rows, align, max_tile):
    """(padded_rows, tile).  tile divides padded_rows and is `align`-aligned.
    When the padded row count exceeds one `align` block we guarantee >= 2 grid
    blocks so the v7x megacore can shard the `parallel` axis over both TCs."""
    rows = max(int(rows), 1)
    rp = _round_up(rows, align)
    if rp <= align:
        return rp, rp
    tile = min(max_tile, _round_up(rp // 2, align))
    rp = _round_up(rows, tile)
    if rp // tile < 2:
        rp = 2 * tile
    return rp, tile


def _pad_rows(a, rp):
    r = a.shape[0]
    return a if r == rp else jnp.pad(a, ((0, rp - r), (0, 0)))


def _mm(a, w):
    """bf16 MXU matmul with f32 accumulation."""
    return jnp.dot(a.astype(MM_DTYPE), w.astype(MM_DTYPE),
                   preferred_element_type=jnp.float32)


def _silu(y):
    return y * jax.nn.sigmoid(y)


def _layernorm(y, g, b, eps=1e-5):
    mu = jnp.mean(y, axis=-1, keepdims=True)
    var = jnp.mean((y - mu) ** 2, axis=-1, keepdims=True)
    return (y - mu) * jax.lax.rsqrt(var + eps) * g + b


# --------------------------------------------------------------------------
# Kernel 1: fused 2-layer edge message MLP (single wide K=dm matmul)
# --------------------------------------------------------------------------
def _edge_message_kernel(f_ref, w1_ref, b1_ref, g0_ref, be0_ref,
                         w2_ref, b2_ref, g1_ref, be1_ref, m_ref):
    # Linear(dm, 2H) -> SiLU -> LN -> Linear(2H, H) -> SiLU -> LN
    y = _mm(f_ref[...], w1_ref[...]) + b1_ref[...]
    y = _silu(y)
    y = _layernorm(y, g0_ref[...], be0_ref[...])
    y = _mm(y, w2_ref[...]) + b2_ref[...]
    y = _silu(y)
    y = _layernorm(y, g1_ref[...], be1_ref[...])
    m_ref[...] = y.astype(m_ref.dtype)                   # single bf16 store


def edge_messages(feats_p, p, te):
    ep, dm = feats_p.shape
    hdim = p['w2'].shape[1]

    weights = (p['w1'], p['b1'], p['ln0_g'], p['ln0_b'],
               p['w2'], p['b2'], p['ln1_g'], p['ln1_b'])

    def full(a):
        return pl.BlockSpec(a.shape, lambda i: (0, 0))

    return pl.pallas_call(
        _edge_message_kernel,
        out_shape=jax.ShapeDtypeStruct((ep, hdim), MM_DTYPE),
        grid=(ep // te,),
        in_specs=[pl.BlockSpec((te, dm), lambda i: (i, 0))]
                 + [full(a) for a in weights],
        out_specs=pl.BlockSpec((te, hdim), lambda i: (i, 0)),
        compiler_params=pltpu.CompilerParams(dimension_semantics=("parallel",)),
    )(feats_p, *weights)                                 # stays padded (ep rows)


# --------------------------------------------------------------------------
# Kernel 2: segment-sum (in-kernel one-hot, edge axis = K grid axis)
#           + node MLP + sigmoid attention gate + energy-prediction MLP
# --------------------------------------------------------------------------
def _node_kernel(rid_ref, m_ref, h_ref,
                 wnh_ref, wna_ref, bn_ref,
                 wa_ref, ba_ref,
                 wp1_ref, bp1_ref, gp_ref, bp_ref, wp2_ref,
                 neh_ref, ne_ref, acc_ref):
    k = pl.program_id(1)
    tn = acc_ref.shape[0]
    tk = rid_ref.shape[1]

    @pl.when(k == 0)
    def _():
        acc_ref[...] = jnp.zeros_like(acc_ref)

    # unsorted_segment_sum(m_ij, row): build the local one-hot on the fly
    # (no O(N*E) HBM matrix), accumulate in f32 via MXU.
    node_ids = (pl.program_id(0) * tn
                + jax.lax.broadcasted_iota(jnp.int32, (tn, tk), 0))
    onehot = (node_ids == rid_ref[...]).astype(MM_DTYPE)     # (tn, tk) bf16
    acc_ref[...] += jnp.dot(onehot, m_ref[...],
                            preferred_element_type=jnp.float32)

    @pl.when(k == pl.num_programs(1) - 1)
    def _():
        agg = acc_ref[...]
        h = h_ref[...].astype(jnp.float32)
        # node_energy_hidden = SiLU(Linear(cat([h, agg])))
        neh = _silu(_mm(h, wnh_ref[...]) + _mm(agg, wna_ref[...]) + bn_ref[...])
        # energy_attn = Sigmoid(Linear(neh))
        attn = jax.nn.sigmoid(_mm(neh, wa_ref[...]) + ba_ref[...])
        z = attn * neh
        # node_energy_pred = Linear -> SiLU -> LN -> Linear(no bias)
        pe = _silu(_mm(z, wp1_ref[...]) + bp1_ref[...])
        pe = _layernorm(pe, gp_ref[...], bp_ref[...])
        ne = _mm(pe, wp2_ref[...])
        neh_ref[...] = neh.astype(neh_ref.dtype)
        ne_ref[...] = ne.astype(ne_ref.dtype)


def node_block(row_ids, m, h_pad, p, tn, tk):
    npad, dn = h_pad.shape
    ep, hdim = m.shape

    weights = (p['wn_h'], p['wn_agg'], p['bn'],
               p['wa'], p['ba'],
               p['wp1'], p['bp1'], p['lnp_g'], p['lnp_b'], p['wp2'])

    def full(a):
        return pl.BlockSpec(a.shape, lambda i, k: (0, 0))

    neh, ne = pl.pallas_call(
        _node_kernel,
        out_shape=(jax.ShapeDtypeStruct((npad, hdim), jnp.float32),
                   jax.ShapeDtypeStruct((npad, 1), jnp.float32)),
        grid=(npad // tn, ep // tk),
        in_specs=([pl.BlockSpec((1, tk), lambda i, k: (0, k)),      # edge row ids
                   pl.BlockSpec((tk, hdim), lambda i, k: (k, 0)),   # m (bf16)
                   pl.BlockSpec((tn, dn), lambda i, k: (i, 0))] +   # h
                  [full(a) for a in weights]),
        out_specs=(pl.BlockSpec((tn, hdim), lambda i, k: (i, 0)),
                   pl.BlockSpec((tn, 1), lambda i, k: (i, 0))),
        scratch_shapes=[pltpu.VMEM((tn, hdim), jnp.float32)],
        compiler_params=pltpu.CompilerParams(
            dimension_semantics=("parallel", "arbitrary")),
    )(row_ids, m, h_pad, *weights)
    return neh, ne


# --------------------------------------------------------------------------
# Geometry (localize + frame features) — lane-dense plain JAX, matches the
# reference numerics (1e-30 under the per-component squares, 1e-8 cos eps).
# --------------------------------------------------------------------------
def frame_features(xr, xc):
    x_diff = xr - xc
    dnorm = jnp.sqrt(jnp.sum(x_diff ** 2 + 1e-30, axis=1, keepdims=True))
    x_diff_n = x_diff / dnorm
    x_cross = jnp.cross(xr, xc)
    cnorm = jnp.sqrt(jnp.sum(x_cross ** 2 + 1e-30, axis=1, keepdims=True))
    x_cross_n = x_cross / cnorm
    x_vert = jnp.cross(x_diff_n, x_cross_n)
    # frame_i / frame_j = x projected onto the local frame columns
    frame_i = jnp.stack([jnp.sum(xr * x_diff_n, 1),
                         jnp.sum(xr * x_cross_n, 1),
                         jnp.sum(xr * x_vert, 1)], axis=1)
    frame_j = jnp.stack([jnp.sum(xc * x_diff_n, 1),
                         jnp.sum(xc * x_cross_n, 1),
                         jnp.sum(xc * x_vert, 1)], axis=1)
    frame_radial = jnp.sum((frame_i - frame_j) ** 2, axis=1, keepdims=True)
    ni = jnp.sqrt(jnp.sum(frame_i ** 2, axis=1, keepdims=True))
    nj = jnp.sqrt(jnp.sum(frame_j ** 2, axis=1, keepdims=True))
    cos = jnp.sum(frame_i * frame_j, axis=1, keepdims=True) / jnp.maximum(ni * nj, 1e-8)
    cos = jnp.clip(cos, -1.0, 1.0)
    sin = jnp.sqrt(1.0 - cos ** 2 + 1e-30)
    return jnp.concatenate([frame_i, frame_j, frame_radial, cos, sin], axis=-1)  # (E, 9)


# --------------------------------------------------------------------------
# Parameter initialization (deterministic, synthetic; same layout as the module)
# --------------------------------------------------------------------------
def init_params(key, in_node_dim, in_bond_dim, hidden, dis_dim, n_nodes):
    keys = iter(jax.random.split(key, 16))

    def lin_w(din, dout, scale=None):
        lim = scale if scale is not None else din ** -0.5
        return jax.random.uniform(next(keys), (din, dout), jnp.float32, -lim, lim)

    def lin_b(din, dout):
        lim = din ** -0.5
        return jax.random.uniform(next(keys), (1, dout), jnp.float32, -lim, lim)

    def ln(d):
        return jnp.ones((1, d), jnp.float32), jnp.zeros((1, d), jnp.float32)

    dn, db, dd, H = in_node_dim, in_bond_dim, dis_dim, hidden
    dm = 2 * dn + 9 + db + dd
    p = {}

    # message_mlp: Linear(dm, 2H) -> SiLU -> LN -> Linear(2H, H) -> SiLU -> LN
    # input order matches the reference concat [h_r | h_c | frame_feats | bond | dis]
    p['w1'] = lin_w(dm, 2 * H).astype(MM_DTYPE)
    p['b1'] = lin_b(dm, 2 * H)
    p['ln0_g'], p['ln0_b'] = ln(2 * H)
    p['w2'] = lin_w(2 * H, H).astype(MM_DTYPE)
    p['b2'] = lin_b(2 * H, H)
    p['ln1_g'], p['ln1_b'] = ln(H)

    # node_energy_hidden: Linear(in_node_dim + H, H) -> SiLU   (split [h | agg])
    wn = lin_w(dn + H, H)
    p['wn_h'] = wn[:dn].astype(MM_DTYPE)
    p['wn_agg'] = wn[dn:].astype(MM_DTYPE)
    p['bn'] = lin_b(dn + H, H)

    # energy_attn: Linear(H, 1) -> Sigmoid
    p['wa'] = lin_w(H, 1).astype(MM_DTYPE)
    p['ba'] = lin_b(H, 1)

    # node_energy_pred: Linear(H, H) -> SiLU -> LN -> Linear(H, 1, no bias)
    p['wp1'] = lin_w(H, H).astype(MM_DTYPE)
    p['bp1'] = lin_b(H, H)
    p['lnp_g'], p['lnp_b'] = ln(H)
    p['wp2'] = lin_w(H, 1, scale=1e-3).astype(MM_DTYPE)

    # total_energy_pooling: Linear(n_nodes, 1, no bias) -> SiLU
    p['pool_w'] = lin_w(n_nodes, 1, scale=1e-3).reshape(1, n_nodes)  # f32, done in jnp
    return p


# --------------------------------------------------------------------------
# energy_block forward (thin JAX glue around the two fused Pallas kernels)
# --------------------------------------------------------------------------
def energy_block_forward(params, x, h, edge_index, bond, dis_emb, *,
                         batch_size, n_nodes):
    row, col = edge_index
    n = h.shape[0]
    e = row.shape[0]
    assert n == batch_size * n_nodes, "nodes must be ordered per-graph"

    # data-dependent gathers stay in plain JAX
    xr = x[row].astype(jnp.float32)
    xc = x[col].astype(jnp.float32)
    hr, hc = h[row], h[col]

    # lane-dense geometry + single wide edge-feature matrix [h_r|h_c|ff|bond|dis]
    ff = frame_features(xr, xc)
    feats = jnp.concatenate([hr.astype(jnp.float32), hc.astype(jnp.float32),
                             ff, bond.astype(jnp.float32),
                             dis_emb.astype(jnp.float32)], axis=-1)

    # pad rows ONCE; everything stays padded until the final slice.
    ep, te = _row_tiling(e, 128, MAX_EDGE_TILE)   # edges: lane-aligned (K axis too)
    npad, tn = _row_tiling(n, 8, MAX_NODE_TILE)   # nodes: sublane-aligned

    feats_p = _pad_rows(feats, ep)

    # fused 2-layer message MLP  -> m_ij (ep, H) bf16
    m = edge_messages(feats_p, params, te)

    # edge row ids; padded edges get id -1 so they never match any node.
    row_p = row.astype(jnp.int32)
    if ep > e:
        row_p = jnp.concatenate([row_p, jnp.full((ep - e,), -1, jnp.int32)])
    row_p = row_p.reshape(1, ep)

    # fused segment-sum + node MLP + attention + energy prediction
    neh_p, ne_p = node_block(row_p, m, _pad_rows(h, npad), params, tn, te)
    node_energy_hidden = neh_p[:n]
    node_energy = ne_p[:n].reshape(batch_size, n_nodes)

    # total_energy_pooling: tiny (B, n_nodes) dot -> SiLU, done in plain jnp
    y = node_energy @ params['pool_w'].T
    total_energy = y * jax.nn.sigmoid(y)
    return total_energy, node_energy_hidden


# --------------------------------------------------------------------------
if __name__ == "__main__":
    key = jax.random.PRNGKey(0)
    batch_size, n_nodes = 2, 8
    in_node_dim, in_bond_dim, hidden, dis_dim = 5, 4, 32, 17
    n_total = batch_size * n_nodes

    # fully connected edges within each graph (no self loops)
    rows, cols = [], []
    for b in range(batch_size):
        for i in range(n_nodes):
            for j in range(n_nodes):
                if i != j:
                    rows.append(b * n_nodes + i)
                    cols.append(b * n_nodes + j)
    row = jnp.asarray(rows, jnp.int32)
    col = jnp.asarray(cols, jnp.int32)
    n_edges = row.shape[0]

    k1, k2, k3, k4, k5 = jax.random.split(key, 5)
    x = jax.random.normal(k1, (n_total, 3), jnp.float32)
    h = jax.random.normal(k2, (n_total, in_node_dim), jnp.float32)
    bond = jax.random.normal(k3, (n_edges, in_bond_dim), jnp.float32)
    dis_emb = jax.random.normal(k4, (n_edges, dis_dim), jnp.float32)

    params = init_params(k5, in_node_dim, in_bond_dim, hidden, dis_dim, n_nodes)

    fwd = jax.jit(energy_block_forward, static_argnames=("batch_size", "n_nodes"))
    total_energy, node_energy_hidden = fwd(
        params, x, h, (row, col), bond, dis_emb,
        batch_size=batch_size, n_nodes=n_nodes)
    jax.block_until_ready((total_energy, node_energy_hidden))

    assert total_energy.shape == (batch_size, 1)
    assert node_energy_hidden.shape == (n_total, hidden)
    assert bool(jnp.all(jnp.isfinite(total_energy)))
    assert bool(jnp.all(jnp.isfinite(node_energy_hidden)))
    print("KERNEL_OK")
</pallas_src>

<mosaic_0001>
module attributes {stable_mosaic.version = 11 : i64} {
  func.func @_node_kernel(%arg0: i32, %arg1: i32, %arg2: memref<1x128xi32, #tpu.memory_space<vmem>>, %arg3: memref<128x32xbf16, #tpu.memory_space<vmem>>, %arg4: memref<8x5xf32, #tpu.memory_space<vmem>>, %arg5: memref<5x32xbf16, #tpu.memory_space<vmem>>, %arg6: memref<32x32xbf16, #tpu.memory_space<vmem>>, %arg7: memref<1x32xf32, #tpu.memory_space<vmem>>, %arg8: memref<32x1xbf16, #tpu.memory_space<vmem>>, %arg9: memref<1x1xf32, #tpu.memory_space<vmem>>, %arg10: memref<32x32xbf16, #tpu.memory_space<vmem>>, %arg11: memref<1x32xf32, #tpu.memory_space<vmem>>, %arg12: memref<1x32xf32, #tpu.memory_space<vmem>>, %arg13: memref<1x32xf32, #tpu.memory_space<vmem>>, %arg14: memref<32x1xbf16, #tpu.memory_space<vmem>>, %arg15: memref<8x32xf32, #tpu.memory_space<vmem>>, %arg16: memref<8x1xf32, #tpu.memory_space<vmem>>, %arg17: memref<8x32xf32, #tpu.memory_space<vmem>>) attributes {dimension_semantics = [#tpu.dimension_semantics<parallel>, #tpu.dimension_semantics<arbitrary>], iteration_bounds = array<i64: 2, 1>, scalar_prefetch = 0 : i64, scratch_operands = 1 : i64, tpu.core_type = #tpu.core_type<tc>, window_params = [{transform_indices = @transform_0, window_bounds = array<i64: 1, 128>}, {transform_indices = @transform_1, window_bounds = array<i64: 128, 32>}, {transform_indices = @transform_2, window_bounds = array<i64: 8, 5>}, {pipeline_mode = #tpu.pipeline_mode<synchronous>, transform_indices = @transform_3, window_bounds = array<i64: 5, 32>}, {pipeline_mode = #tpu.pipeline_mode<synchronous>, transform_indices = @transform_4, window_bounds = array<i64: 32, 32>}, {pipeline_mode = #tpu.pipeline_mode<synchronous>, transform_indices = @transform_5, window_bounds = array<i64: 1, 32>}, {pipeline_mode = #tpu.pipeline_mode<synchronous>, transform_indices = @transform_6, window_bounds = array<i64: 32, 1>}, {pipeline_mode = #tpu.pipeline_mode<synchronous>, transform_indices = @transform_7, window_bounds = array<i64: 1, 1>}, {pipeline_mode = #tpu.pipeline_mode<synchronous>, transform_indices = @transform_8, window_bounds = array<i64: 32, 32>}, {pipeline_mode = #tpu.pipeline_mode<synchronous>, transform_indices = @transform_9, window_bounds = array<i64: 1, 32>}, {pipeline_mode = #tpu.pipeline_mode<synchronous>, transform_indices = @transform_10, window_bounds = array<i64: 1, 32>}, {pipeline_mode = #tpu.pipeline_mode<synchronous>, transform_indices = @transform_11, window_bounds = array<i64: 1, 32>}, {pipeline_mode = #tpu.pipeline_mode<synchronous>, transform_indices = @transform_12, window_bounds = array<i64: 32, 1>}, {transform_indices = @transform_13, window_bounds = array<i64: 8, 32>}, {transform_indices = @transform_14, window_bounds = array<i64: 8, 1>}]} {
    %c0_i32 = arith.constant 0 : i32
    %0 = arith.cmpi eq, %arg1, %c0_i32 : i32
    %1 = arith.extui %0 : i1 to i32
    %c0_i32_0 = arith.constant 0 : i32
    %2 = arith.cmpi ne, %1, %c0_i32_0 : i32
    scf.if %2 {
      %cst_10 = arith.constant 0.000000e+00 : f32
      %21 = vector.broadcast %cst_10 : f32 to vector<8x32xf32>
      %c0_11 = arith.constant 0 : index
      %c0_12 = arith.constant 0 : index
      %22 = vector.load %arg17[%c0_11, %c0_12] : memref<8x32xf32, #tpu.memory_space<vmem>>, vector<8x32xf32>
      tpu.vector_store %arg17[%c0_11, %c0_12], %21 {strides = array<i32>} : memref<8x32xf32, #tpu.memory_space<vmem>>, vector<8x32xf32>,
    } else {
    }
    %c8_i32 = arith.constant 8 : i32
    %3 = arith.muli %arg0, %c8_i32 : i32
    %4 = tpu.iota {dimensions = array<i32: 0>} : vector<8x128xi32>
    %5 = vector.broadcast %3 : i32 to vector<8x128xi32>
    %6 = arith.addi %5, %4 : vector<8x128xi32>
    %c0 = arith.constant 0 : index
    %c0_1 = arith.constant 0 : index
    %7 = vector.load %arg2[%c0, %c0_1] : memref<1x128xi32, #tpu.memory_space<vmem>>, vector<1x128xi32>
    %8 = vector.broadcast %7 : vector<1x128xi32> to vector<8x128xi32>
    %9 = arith.cmpi eq, %6, %8 : vector<8x128xi32>
    %10 = arith.extui %9 : vector<8x128xi1> to vector<8x128xi32>
    %11 = arith.sitofp %10 : vector<8x128xi32> to vector<8x128xf32>
    %12 = arith.truncf %11 : vector<8x128xf32> to vector<8x128xbf16>
    %c0_2 = arith.constant 0 : index
    %c0_3 = arith.constant 0 : index
    %13 = vector.load %arg17[%c0_2, %c0_3] : memref<8x32xf32, #tpu.memory_space<vmem>>, vector<8x32xf32>
    %c0_4 = arith.constant 0 : index
    %c0_5 = arith.constant 0 : index
    %14 = vector.load %arg3[%c0_4, %c0_5] : memref<128x32xbf16, #tpu.memory_space<vmem>>, vector<128x32xbf16>
    %cst = arith.constant dense<0.000000e+00> : vector<8x32xf32>
    %15 = tpu.matmul %12, %14, %cst {dimension_numbers = #tpu.dot_dimension_numbers<[1], [0], [0], [1], [0, 0, 1, 1], [], []>} : vector<8x128xbf16>, vector<128x32xbf16>, vector<8x32xf32> -> vector<8x32xf32>
    %16 = arith.addf %13, %15 : vector<8x32xf32>
    %c0_6 = arith.constant 0 : index
    %c0_7 = arith.constant 0 : index
    %17 = vector.load %arg17[%c0_6, %c0_7] : memref<8x32xf32, #tpu.memory_space<vmem>>, vector<8x32xf32>
    tpu.vector_store %arg17[%c0_6, %c0_7], %16 {strides = array<i32>} : memref<8x32xf32, #tpu.memory_space<vmem>>, vector<8x32xf32>,
    %c0_i32_8 = arith.constant 0 : i32
    %18 = arith.cmpi eq, %arg1, %c0_i32_8 : i32
    %19 = arith.extui %18 : i1 to i32
    %c0_i32_9 = arith.constant 0 : i32
    %20 = arith.cmpi ne, %19, %c0_i32_9 : i32
    scf.if %20 {
      %c0_10 = arith.constant 0 : index
      %c0_11 = arith.constant 0 : index
      %21 = vector.load %arg17[%c0_10, %c0_11] : memref<8x32xf32, #tpu.memory_space<vmem>>, vector<8x32xf32>
      %c0_12 = arith.constant 0 : index
      %c0_13 = arith.constant 0 : index
      %22 = vector.load %arg4[%c0_12, %c0_13] : memref<8x5xf32, #tpu.memory_space<vmem>>, vector<8x5xf32>
      %c0_14 = arith.constant 0 : index
      %c0_15 = arith.constant 0 : index
      %23 = vector.load %arg5[%c0_14, %c0_15] : memref<5x32xbf16, #tpu.memory_space<vmem>>, vector<5x32xbf16>
      %24 = arith.truncf %22 : vector<8x5xf32> to vector<8x5xbf16>
      %cst_16 = arith.constant dense<0.000000e+00> : vector<8x32xf32>
      %25 = tpu.matmul %24, %23, %cst_16 {dimension_numbers = #tpu.dot_dimension_numbers<[1], [0], [0], [1], [0, 0, 1, 1], [], []>} : vector<8x5xbf16>, vector<5x32xbf16>, vector<8x32xf32> -> vector<8x32xf32>
      %c0_17 = arith.constant 0 : index
      %c0_18 = arith.constant 0 : index
      %26 = vector.load %arg6[%c0_17, %c0_18] : memref<32x32xbf16, #tpu.memory_space<vmem>>, vector<32x32xbf16>
      %27 = arith.truncf %21 : vector<8x32xf32> to vector<8x32xbf16>
      %cst_19 = arith.constant dense<0.000000e+00> : vector<8x32xf32>
      %28 = tpu.matmul %27, %26, %cst_19 {dimension_numbers = #tpu.dot_dimension_numbers<[1], [0], [0], [1], [0, 0, 1, 1], [], []>} : vector<8x32xbf16>, vector<32x32xbf16>, vector<8x32xf32> -> vector<8x32xf32>
      %29 = arith.addf %25, %28 : vector<8x32xf32>
      %c0_20 = arith.constant 0 : index
      %c0_21 = arith.constant 0 : index
      %30 = vector.load %arg7[%c0_20, %c0_21] : memref<1x32xf32, #tpu.memory_space<vmem>>, vector<1x32xf32>
      %31 = vector.broadcast %30 : vector<1x32xf32> to vector<8x32xf32>
      %32 = arith.addf %29, %31 : vector<8x32xf32>
      %33 = arith.negf %32 : vector<8x32xf32>
      %34 = math.exp %33 : vector<8x32xf32>
      %cst_22 = arith.constant 1.000000e+00 : f32
      %35 = vector.broadcast %cst_22 : f32 to vector<8x32xf32>
      %36 = arith.addf %35, %34 : vector<8x32xf32>
      %37 = arith.divf %35, %36 : vector<8x32xf32>
      %38 = arith.mulf %32, %37 : vector<8x32xf32>
      %c0_23 = arith.constant 0 : index
      %c0_24 = arith.constant 0 : index
      %39 = vector.load %arg8[%c0_23, %c0_24] : memref<32x1xbf16, #tpu.memory_space<vmem>>, vector<32x1xbf16>
      %40 = arith.truncf %38 : vector<8x32xf32> to vector<8x32xbf16>
      %cst_25 = arith.constant dense<0.000000e+00> : vector<8x1xf32>
      %41 = tpu.matmul %40, %39, %cst_25 {dimension_numbers = #tpu.dot_dimension_numbers<[1], [0], [0], [1], [0, 0, 1, 1], [], []>} : vector<8x32xbf16>, vector<32x1xbf16>, vector<8x1xf32> -> vector<8x1xf32>
      %c0_26 = arith.constant 0 : index
      %c0_27 = arith.constant 0 : index
      %42 = vector.load %arg9[%c0_26, %c0_27] : memref<1x1xf32, #tpu.memory_space<vmem>>, vector<1x1xf32>
      %43 = vector.broadcast %42 : vector<1x1xf32> to vector<8x1xf32>
      %44 = arith.addf %41, %43 : vector<8x1xf32>
      %45 = arith.negf %44 : vector<8x1xf32>
      %46 = math.exp %45 : vector<8x1xf32>
      %cst_28 = arith.constant 1.000000e+00 : f32
      %47 = vector.broadcast %cst_28 : f32 to vector<8x1xf32>
      %48 = arith.addf %47, %46 : vector<8x1xf32>
      %49 = arith.divf %47, %48 : vector<8x1xf32>
      %50 = vector.broadcast %49 : vector<8x1xf32> to vector<8x32xf32>
      %51 = arith.mulf %50, %38 : vector<8x32xf32>
      %c0_29 = arith.constant 0 : index
      %c0_30 = arith.constant 0 : index
      %52 = vector.load %arg10[%c0_29, %c0_30] : memref<32x32xbf16, #tpu.memory_space<vmem>>, vector<32x32xbf16>
      %53 = arith.truncf %51 : vector<8x32xf32> to vector<8x32xbf16>
      %cst_31 = arith.constant dense<0.000000e+00> : vector<8x32xf32>
      %54 = tpu.matmul %53, %52, %cst_31 {dimension_numbers = #tpu.dot_dimension_numbers<[1], [0], [0], [1], [0, 0, 1, 1], [], []>} : vector<8x32xbf16>, vector<32x32xbf16>, vector<8x32xf32> -> vector<8x32xf32>
      %c0_32 = arith.constant 0 : index
      %c0_33 = arith.constant 0 : index
      %55 = vector.load %arg11[%c0_32, %c0_33] : memref<1x32xf32, #tpu.memory_space<vmem>>, vector<1x32xf32>
      %56 = vector.broadcast %55 : vector<1x32xf32> to vector<8x32xf32>
      %57 = arith.addf %54, %56 : vector<8x32xf32>
      %58 = arith.negf %57 : vector<8x32xf32>
      %59 = math.exp %58 : vector<8x32xf32>
      %cst_34 = arith.constant 1.000000e+00 : f32
      %60 = vector.broadcast %cst_34 : f32 to vector<8x32xf32>
      %61 = arith.addf %60, %59 : vector<8x32xf32>
      %62 = arith.divf %60, %61 : vector<8x32xf32>
      %63 = arith.mulf %57, %62 : vector<8x32xf32>
      %c0_35 = arith.constant 0 : index
      %c0_36 = arith.constant 0 : index
      %64 = vector.load %arg12[%c0_35, %c0_36] : memref<1x32xf32, #tpu.memory_space<vmem>>, vector<1x32xf32>
      %c0_37 = arith.constant 0 : index
      %c0_38 = arith.constant 0 : index
      %65 = vector.load %arg13[%c0_37, %c0_38] : memref<1x32xf32, #tpu.memory_space<vmem>>, vector<1x32xf32>
      %cst_39 = arith.constant dense<0.000000e+00> : vector<8xf32>
      %66 = vector.multi_reduction <add>, %63, %cst_39 [1] : vector<8x32xf32> to vector<8xf32>
      %67 = vector.shape_cast %66 : vector<8xf32> to vector<8x1xf32>
      %cst_40 = arith.constant 3.200000e+01 : f32
      %68 = vector.broadcast %cst_40 : f32 to vector<8x1xf32>
      %69 = arith.divf %67, %68 : vector<8x1xf32>
      %70 = vector.broadcast %69 : vector<8x1xf32> to vector<8x32xf32>
      %71 = arith.subf %63, %70 : vector<8x32xf32>
      %72 = arith.mulf %71, %71 : vector<8x32xf32>
      %cst_41 = arith.constant dense<0.000000e+00> : vector<8xf32>
      %73 = vector.multi_reduction <add>, %72, %cst_41 [1] : vector<8x32xf32> to vector<8xf32>
      %74 = vector.shape_cast %73 : vector<8xf32> to vector<8x1xf32>
      %cst_42 = arith.constant 3.200000e+01 : f32
      %75 = vector.broadcast %cst_42 : f32 to vector<8x1xf32>
      %76 = arith.divf %74, %75 : vector<8x1xf32>
      %77 = vector.broadcast %69 : vector<8x1xf32> to vector<8x32xf32>
      %78 = arith.subf %63, %77 : vector<8x32xf32>
      %cst_43 = arith.constant 9.99999974E-6 : f32
      %79 = vector.broadcast %cst_43 : f32 to vector<8x1xf32>
      %80 = arith.addf %76, %79 : vector<8x1xf32>
      %81 = math.rsqrt %80 : vector<8x1xf32>
      %82 = vector.broadcast %81 : vector<8x1xf32> to vector<8x32xf32>
      %83 = arith.mulf %78, %82 : vector<8x32xf32>
      %84 = vector.broadcast %64 : vector<1x32xf32> to vector<8x32xf32>
      %85 = arith.mulf %83, %84 : vector<8x32xf32>
      %86 = vector.broadcast %65 : vector<1x32xf32> to vector<8x32xf32>
      %87 = arith.addf %85, %86 : vector<8x32xf32>
      %c0_44 = arith.constant 0 : index
      %c0_45 = arith.constant 0 : index
      %88 = vector.load %arg14[%c0_44, %c0_45] : memref<32x1xbf16, #tpu.memory_space<vmem>>, vector<32x1xbf16>
      %89 = arith.truncf %87 : vector<8x32xf32> to vector<8x32xbf16>
      %cst_46 = arith.constant dense<0.000000e+00> : vector<8x1xf32>
      %90 = tpu.matmul %89, %88, %cst_46 {dimension_numbers = #tpu.dot_dimension_numbers<[1], [0], [0], [1], [0, 0, 1, 1], [], []>} : vector<8x32xbf16>, vector<32x1xbf16>, vector<8x1xf32> -> vector<8x1xf32>
      %c0_47 = arith.constant 0 : index
      %c0_48 = arith.constant 0 : index
      %91 = vector.load %arg15[%c0_47, %c0_48] : memref<8x32xf32, #tpu.memory_space<vmem>>, vector<8x32xf32>
      tpu.vector_store %arg15[%c0_47, %c0_48], %38 {strides = array<i32>} : memref<8x32xf32, #tpu.memory_space<vmem>>, vector<8x32xf32>,
      %c0_49 = arith.constant 0 : index
      %c0_50 = arith.constant 0 : index
      %92 = vector.load %arg16[%c0_49, %c0_50] : memref<8x1xf32, #tpu.memory_space<vmem>>, vector<8x1xf32>
      tpu.vector_store %arg16[%c0_49, %c0_50], %90 {strides = array<i32>} : memref<8x1xf32, #tpu.memory_space<vmem>>, vector<8x1xf32>,
    } else {
    }
    return
  }
  func.func @transform_0(%arg0: i32, %arg1: i32) -> (i32, i32) {
    %c0_i32 = arith.constant 0 : i32
    %c0_i32_0 = arith.constant 0 : i32
    return %c0_i32, %arg1 : i32, i32
  }
  func.func @transform_1(%arg0: i32, %arg1: i32) -> (i32, i32) {
    %c0_i32 = arith.constant 0 : i32
    %c0_i32_0 = arith.constant 0 : i32
    return %arg1, %c0_i32 : i32, i32
  }
  func.func @transform_2(%arg0: i32, %arg1: i32) -> (i32, i32) {
    %c0_i32 = arith.constant 0 : i32
    %c0_i32_0 = arith.constant 0 : i32
    return %arg0, %c0_i32 : i32, i32
  }
  func.func @transform_3(%arg0: i32, %arg1: i32) -> (i32, i32) {
    %c0_i32 = arith.constant 0 : i32
    %c0_i32_0 = arith.constant 0 : i32
    %c0_i32_1 = arith.constant 0 : i32
    return %c0_i32, %c0_i32_0 : i32, i32
  }
  func.func @transform_4(%arg0: i32, %arg1: i32) -> (i32, i32) {
    %c0_i32 = arith.constant 0 : i32
    %c0_i32_0 = arith.constant 0 : i32
    %c0_i32_1 = arith.constant 0 : i32
    return %c0_i32, %c0_i32_0 : i32, i32
  }
  func.func @transform_5(%arg0: i32, %arg1: i32) -> (i32, i32) {
    %c0_i32 = arith.constant 0 : i32
    %c0_i32_0 = arith.constant 0 : i32
    %c0_i32_1 = arith.constant 0 : i32
    return %c0_i32, %c0_i32_0 : i32, i32
  }
  func.func @transform_6(%arg0: i32, %arg1: i32) -> (i32, i32) {
    %c0_i32 = arith.constant 0 : i32
    %c0_i32_0 = arith.constant 0 : i32
    %c0_i32_1 = arith.constant 0 : i32
    return %c0_i32, %c0_i32_0 : i32, i32
  }
  func.func @transform_7(%arg0: i32, %arg1: i32) -> (i32, i32) {
    %c0_i32 = arith.constant 0 : i32
    %c0_i32_0 = arith.constant 0 : i32
    %c0_i32_1 = arith.constant 0 : i32
    return %c0_i32, %c0_i32_0 : i32, i32
  }
  func.func @transform_8(%arg0: i32, %arg1: i32) -> (i32, i32) {
    %c0_i32 = arith.constant 0 : i32
    %c0_i32_0 = arith.constant 0 : i32
    %c0_i32_1 = arith.constant 0 : i32
    return %c0_i32, %c0_i32_0 : i32, i32
  }
  func.func @transform_9(%arg0: i32, %arg1: i32) -> (i32, i32) {
    %c0_i32 = arith.constant 0 : i32
    %c0_i32_0 = arith.constant 0 : i32
    %c0_i32_1 = arith.constant 0 : i32
    return %c0_i32, %c0_i32_0 : i32, i32
  }
  func.func @transform_10(%arg0: i32, %arg1: i32) -> (i32, i32) {
    %c0_i32 = arith.constant 0 : i32
    %c0_i32_0 = arith.constant 0 : i32
    %c0_i32_1 = arith.constant 0 : i32
    return %c0_i32, %c0_i32_0 : i32, i32
  }
  func.func @transform_11(%arg0: i32, %arg1: i32) -> (i32, i32) {
    %c0_i32 = arith.constant 0 : i32
    %c0_i32_0 = arith.constant 0 : i32
    %c0_i32_1 = arith.constant 0 : i32
    return %c0_i32, %c0_i32_0 : i32, i32
  }
  func.func @transform_12(%arg0: i32, %arg1: i32) -> (i32, i32) {
    %c0_i32 = arith.constant 0 : i32
    %c0_i32_0 = arith.constant 0 : i32
    %c0_i32_1 = arith.constant 0 : i32
    return %c0_i32, %c0_i32_0 : i32, i32
  }
  func.func @transform_13(%arg0: i32, %arg1: i32) -> (i32, i32) {
    %c0_i32 = arith.constant 0 : i32
    %c0_i32_0 = arith.constant 0 : i32
    return %arg0, %c0_i32 : i32, i32
  }
  func.func @transform_14(%arg0: i32, %arg1: i32) -> (i32, i32) {
    %c0_i32 = arith.constant 0 : i32
    %c0_i32_0 = arith.constant 0 : i32
    return %arg0, %c0_i32 : i32, i32
  }
}

module attributes {stable_mosaic.version = 11 : i64} {
  func.func @_edge_message_kernel(%arg0: i32, %arg1: memref<128x40xf32, #tpu.memory_space<vmem>>, %arg2: memref<40x64xbf16, #tpu.memory_space<vmem>>, %arg3: memref<1x64xf32, #tpu.memory_space<vmem>>, %arg4: memref<1x64xf32, #tpu.memory_space<vmem>>, %arg5: memref<1x64xf32, #tpu.memory_space<vmem>>, %arg6: memref<64x32xbf16, #tpu.memory_space<vmem>>, %arg7: memref<1x32xf32, #tpu.memory_space<vmem>>, %arg8: memref<1x32xf32, #tpu.memory_space<vmem>>, %arg9: memref<1x32xf32, #tpu.memory_space<vmem>>, %arg10: memref<128x32xbf16, #tpu.memory_space<vmem>>) attributes {dimension_semantics = [#tpu.dimension_semantics<parallel>], iteration_bounds = array<i64: 1>, scalar_prefetch = 0 : i64, scratch_operands = 0 : i64, tpu.core_type = #tpu.core_type<tc>, window_params = [{transform_indices = @transform_0, window_bounds = array<i64: 128, 40>}, {pipeline_mode = #tpu.pipeline_mode<synchronous>, transform_indices = @transform_1, window_bounds = array<i64: 40, 64>}, {pipeline_mode = #tpu.pipeline_mode<synchronous>, transform_indices = @transform_2, window_bounds = array<i64: 1, 64>}, {pipeline_mode = #tpu.pipeline_mode<synchronous>, transform_indices = @transform_3, window_bounds = array<i64: 1, 64>}, {pipeline_mode = #tpu.pipeline_mode<synchronous>, transform_indices = @transform_4, window_bounds = array<i64: 1, 64>}, {pipeline_mode = #tpu.pipeline_mode<synchronous>, transform_indices = @transform_5, window_bounds = array<i64: 64, 32>}, {pipeline_mode = #tpu.pipeline_mode<synchronous>, transform_indices = @transform_6, window_bounds = array<i64: 1, 32>}, {pipeline_mode = #tpu.pipeline_mode<synchronous>, transform_indices = @transform_7, window_bounds = array<i64: 1, 32>}, {pipeline_mode = #tpu.pipeline_mode<synchronous>, transform_indices = @transform_8, window_bounds = array<i64: 1, 32>}, {transform_indices = @transform_9, window_bounds = array<i64: 128, 32>}]} {
    %c0 = arith.constant 0 : index
    %c0_0 = arith.constant 0 : index
    %0 = vector.load %arg1[%c0, %c0_0] : memref<128x40xf32, #tpu.memory_space<vmem>>, vector<128x40xf32>
    %c0_1 = arith.constant 0 : index
    %c0_2 = arith.constant 0 : index
    %1 = vector.load %arg2[%c0_1, %c0_2] : memref<40x64xbf16, #tpu.memory_space<vmem>>, vector<40x64xbf16>
    %2 = arith.truncf %0 : vector<128x40xf32> to vector<128x40xbf16>
    %cst = arith.constant dense<0.000000e+00> : vector<128x64xf32>
    %3 = tpu.matmul %2, %1, %cst {dimension_numbers = #tpu.dot_dimension_numbers<[1], [0], [0], [1], [0, 0, 1, 1], [], []>} : vector<128x40xbf16>, vector<40x64xbf16>, vector<128x64xf32> -> vector<128x64xf32>
    %c0_3 = arith.constant 0 : index
    %c0_4 = arith.constant 0 : index
    %4 = vector.load %arg3[%c0_3, %c0_4] : memref<1x64xf32, #tpu.memory_space<vmem>>, vector<1x64xf32>
    %5 = vector.broadcast %4 : vector<1x64xf32> to vector<128x64xf32>
    %6 = arith.addf %3, %5 : vector<128x64xf32>
    %7 = arith.negf %6 : vector<128x64xf32>
    %8 = math.exp %7 : vector<128x64xf32>
    %cst_5 = arith.constant 1.000000e+00 : f32
    %9 = vector.broadcast %cst_5 : f32 to vector<128x64xf32>
    %10 = arith.addf %9, %8 : vector<128x64xf32>
    %11 = arith.divf %9, %10 : vector<128x64xf32>
    %12 = arith.mulf %6, %11 : vector<128x64xf32>
    %c0_6 = arith.constant 0 : index
    %c0_7 = arith.constant 0 : index
    %13 = vector.load %arg4[%c0_6, %c0_7] : memref<1x64xf32, #tpu.memory_space<vmem>>, vector<1x64xf32>
    %c0_8 = arith.constant 0 : index
    %c0_9 = arith.constant 0 : index
    %14 = vector.load %arg5[%c0_8, %c0_9] : memref<1x64xf32, #tpu.memory_space<vmem>>, vector<1x64xf32>
    %cst_10 = arith.constant dense<0.000000e+00> : vector<128xf32>
    %15 = vector.multi_reduction <add>, %12, %cst_10 [1] : vector<128x64xf32> to vector<128xf32>
    %16 = vector.shape_cast %15 : vector<128xf32> to vector<128x1xf32>
    %cst_11 = arith.constant 6.400000e+01 : f32
    %17 = vector.broadcast %cst_11 : f32 to vector<128x1xf32>
    %18 = arith.divf %16, %17 : vector<128x1xf32>
    %19 = vector.broadcast %18 : vector<128x1xf32> to vector<128x64xf32>
    %20 = arith.subf %12, %19 : vector<128x64xf32>
    %21 = arith.mulf %20, %20 : vector<128x64xf32>
    %cst_12 = arith.constant dense<0.000000e+00> : vector<128xf32>
    %22 = vector.multi_reduction <add>, %21, %cst_12 [1] : vector<128x64xf32> to vector<128xf32>
    %23 = vector.shape_cast %22 : vector<128xf32> to vector<128x1xf32>
    %cst_13 = arith.constant 6.400000e+01 : f32
    %24 = vector.broadcast %cst_13 : f32 to vector<128x1xf32>
    %25 = arith.divf %23, %24 : vector<128x1xf32>
    %26 = vector.broadcast %18 : vector<128x1xf32> to vector<128x64xf32>
    %27 = arith.subf %12, %26 : vector<128x64xf32>
    %cst_14 = arith.constant 9.99999974E-6 : f32
    %28 = vector.broadcast %cst_14 : f32 to vector<128x1xf32>
    %29 = arith.addf %25, %28 : vector<128x1xf32>
    %30 = math.rsqrt %29 : vector<128x1xf32>
    %31 = vector.broadcast %30 : vector<128x1xf32> to vector<128x64xf32>
    %32 = arith.mulf %27, %31 : vector<128x64xf32>
    %33 = vector.broadcast %13 : vector<1x64xf32> to vector<128x64xf32>
    %34 = arith.mulf %32, %33 : vector<128x64xf32>
    %35 = vector.broadcast %14 : vector<1x64xf32> to vector<128x64xf32>
    %36 = arith.addf %34, %35 : vector<128x64xf32>
    %c0_15 = arith.constant 0 : index
    %c0_16 = arith.constant 0 : index
    %37 = vector.load %arg6[%c0_15, %c0_16] : memref<64x32xbf16, #tpu.memory_space<vmem>>, vector<64x32xbf16>
    %38 = arith.truncf %36 : vector<128x64xf32> to vector<128x64xbf16>
    %cst_17 = arith.constant dense<0.000000e+00> : vector<128x32xf32>
    %39 = tpu.matmul %38, %37, %cst_17 {dimension_numbers = #tpu.dot_dimension_numbers<[1], [0], [0], [1], [0, 0, 1, 1], [], []>} : vector<128x64xbf16>, vector<64x32xbf16>, vector<128x32xf32> -> vector<128x32xf32>
    %c0_18 = arith.constant 0 : index
    %c0_19 = arith.constant 0 : index
    %40 = vector.load %arg7[%c0_18, %c0_19] : memref<1x32xf32, #tpu.memory_space<vmem>>, vector<1x32xf32>
    %41 = vector.broadcast %40 : vector<1x32xf32> to vector<128x32xf32>
    %42 = arith.addf %39, %41 : vector<128x32xf32>
    %43 = arith.negf %42 : vector<128x32xf32>
    %44 = math.exp %43 : vector<128x32xf32>
    %cst_20 = arith.constant 1.000000e+00 : f32
    %45 = vector.broadcast %cst_20 : f32 to vector<128x32xf32>
    %46 = arith.addf %45, %44 : vector<128x32xf32>
    %47 = arith.divf %45, %46 : vector<128x32xf32>
    %48 = arith.mulf %42, %47 : vector<128x32xf32>
    %c0_21 = arith.constant 0 : index
    %c0_22 = arith.constant 0 : index
    %49 = vector.load %arg8[%c0_21, %c0_22] : memref<1x32xf32, #tpu.memory_space<vmem>>, vector<1x32xf32>
    %c0_23 = arith.constant 0 : index
    %c0_24 = arith.constant 0 : index
    %50 = vector.load %arg9[%c0_23, %c0_24] : memref<1x32xf32, #tpu.memory_space<vmem>>, vector<1x32xf32>
    %cst_25 = arith.constant dense<0.000000e+00> : vector<128xf32>
    %51 = vector.multi_reduction <add>, %48, %cst_25 [1] : vector<128x32xf32> to vector<128xf32>
    %52 = vector.shape_cast %51 : vector<128xf32> to vector<128x1xf32>
    %cst_26 = arith.constant 3.200000e+01 : f32
    %53 = vector.broadcast %cst_26 : f32 to vector<128x1xf32>
    %54 = arith.divf %52, %53 : vector<128x1xf32>
    %55 = vector.broadcast %54 : vector<128x1xf32> to vector<128x32xf32>
    %56 = arith.subf %48, %55 : vector<128x32xf32>
    %57 = arith.mulf %56, %56 : vector<128x32xf32>
    %cst_27 = arith.constant dense<0.000000e+00> : vector<128xf32>
    %58 = vector.multi_reduction <add>, %57, %cst_27 [1] : vector<128x32xf32> to vector<128xf32>
    %59 = vector.shape_cast %58 : vector<128xf32> to vector<128x1xf32>
    %cst_28 = arith.constant 3.200000e+01 : f32
    %60 = vector.broadcast %cst_28 : f32 to vector<128x1xf32>
    %61 = arith.divf %59, %60 : vector<128x1xf32>
    %62 = vector.broadcast %54 : vector<128x1xf32> to vector<128x32xf32>
    %63 = arith.subf %48, %62 : vector<128x32xf32>
    %cst_29 = arith.constant 9.99999974E-6 : f32
    %64 = vector.broadcast %cst_29 : f32 to vector<128x1xf32>
    %65 = arith.addf %61, %64 : vector<128x1xf32>
    %66 = math.rsqrt %65 : vector<128x1xf32>
    %67 = vector.broadcast %66 : vector<128x1xf32> to vector<128x32xf32>
    %68 = arith.mulf %63, %67 : vector<128x32xf32>
    %69 = vector.broadcast %49 : vector<1x32xf32> to vector<128x32xf32>
    %70 = arith.mulf %68, %69 : vector<128x32xf32>
    %71 = vector.broadcast %50 : vector<1x32xf32> to vector<128x32xf32>
    %72 = arith.addf %70, %71 : vector<128x32xf32>
    %73 = arith.truncf %72 : vector<128x32xf32> to vector<128x32xbf16>
    %c0_30 = arith.constant 0 : index
    %c0_31 = arith.constant 0 : index
    %74 = vector.load %arg10[%c0_30, %c0_31] : memref<128x32xbf16, #tpu.memory_space<vmem>>, vector<128x32xbf16>
    tpu.vector_store %arg10[%c0_30, %c0_31], %73 {strides = array<i32>} : memref<128x32xbf16, #tpu.memory_space<vmem>>, vector<128x32xbf16>,
    return
  }
  func.func @transform_0(%arg0: i32) -> (i32, i32) {
    %c0_i32 = arith.constant 0 : i32
    %c0_i32_0 = arith.constant 0 : i32
    return %arg0, %c0_i32 : i32, i32
  }
  func.func @transform_1(%arg0: i32) -> (i32, i32) {
    %c0_i32 = arith.constant 0 : i32
    %c0_i32_0 = arith.constant 0 : i32
    %c0_i32_1 = arith.constant 0 : i32
    return %c0_i32, %c0_i32_0 : i32, i32
  }
  func.func @transform_2(%arg0: i32) -> (i32, i32) {
    %c0_i32 = arith.constant 0 : i32
    %c0_i32_0 = arith.constant 0 : i32
    %c0_i32_1 = arith.constant 0 : i32
    return %c0_i32, %c0_i32_0 : i32, i32
  }
  func.func @transform_3(%arg0: i32) -> (i32, i32) {
    %c0_i32 = arith.constant 0 : i32
    %c0_i32_0 = arith.constant 0 : i32
    %c0_i32_1 = arith.constant 0 : i32
    return %c0_i32, %c0_i32_0 : i32, i32
  }
  func.func @transform_4(%arg0: i32) -> (i32, i32) {
    %c0_i32 = arith.constant 0 : i32
    %c0_i32_0 = arith.constant 0 : i32
    %c0_i32_1 = arith.constant 0 : i32
    return %c0_i32, %c0_i32_0 : i32, i32
  }
  func.func @transform_5(%arg0: i32) -> (i32, i32) {
    %c0_i32 = arith.constant 0 : i32
    %c0_i32_0 = arith.constant 0 : i32
    %c0_i32_1 = arith.constant 0 : i32
    return %c0_i32, %c0_i32_0 : i32, i32
  }
  func.func @transform_6(%arg0: i32) -> (i32, i32) {
    %c0_i32 = arith.constant 0 : i32
    %c0_i32_0 = arith.constant 0 : i32
    %c0_i32_1 = arith.constant 0 : i32
    return %c0_i32, %c0_i32_0 : i32, i32
  }
  func.func @transform_7(%arg0: i32) -> (i32, i32) {
    %c0_i32 = arith.constant 0 : i32
    %c0_i32_0 = arith.constant 0 : i32
    %c0_i32_1 = arith.constant 0 : i32
    return %c0_i32, %c0_i32_0 : i32, i32
  }
  func.func @transform_8(%arg0: i32) -> (i32, i32) {
    %c0_i32 = arith.constant 0 : i32
    %c0_i32_0 = arith.constant 0 : i32
    %c0_i32_1 = arith.constant 0 : i32
    return %c0_i32, %c0_i32_0 : i32, i32
  }
  func.func @transform_9(%arg0: i32) -> (i32, i32) {
    %c0_i32 = arith.constant 0 : i32
    %c0_i32_0 = arith.constant 0 : i32
    return %arg0, %c0_i32 : i32, i32
  }
}

</mosaic_0001>

<bundles_post_ra>
// kernel: energy_block_forward.3
= control target key start
LH: loop header
LB: loop body
LE: loop exit
PB: predicated region body
PF: predicated region fallthrough
CT: control target
= control target key end

     0   :  { %s1788_s0 = inlined_call_operand.vmem [shape: s32[1,128], index: 0, kind: input, shape index: {}]   ;;  %s1789_s1 = inlined_call_operand.vmem [shape: bf16[128,32], index: 1, kind: input, shape index: {}]   ;;  %s1790_s2 = inlined_call_operand.vmem [shape: f32[16,5], index: 2, kind: input, shape index: {}]   ;;  %s1791_s3 = inlined_call_operand.vmem [shape: bf16[5,32], index: 3, kind: input, shape index: {}]   ;;  %s1792_s4 = inlined_call_operand.vmem [shape: bf16[32,32], index: 4, kind: input, shape index: {}]   ;;  %s1793_s5 = inlined_call_operand.vmem [shape: f32[1,32], index: 5, kind: input, shape index: {}]   ;;  %s1794_s6 = inlined_call_operand.vmem [shape: bf16[32,1], index: 6, kind: input, shape index: {}]   ;;  %s1795_s7 = inlined_call_operand.<no memory space> [shape: f32[1,1], index: 7, kind: input, shape index: {}]   ;;  %s1796_s8 = inlined_call_operand.vmem [shape: bf16[32,32], index: 8, kind: input, shape index: {}]   ;;  %s1797_s9 = inlined_call_operand.vmem [shape: f32[1,32], index: 9, kind: input, shape index: {}]   ;;  %s1798_s10 = inlined_call_operand.vmem [shape: f32[1,32], index: 10, kind: input, shape index: {}]   ;;  %s1799_s11 = inlined_call_operand.vmem [shape: f32[1,32], index: 11, kind: input, shape index: {}]   ;;  %s1800_s12 = inlined_call_operand.vmem [shape: bf16[32,1], index: 12, kind: input, shape index: {}]   ;;  %s1801_s13 = inlined_call_operand.hbm [shape: f32[16,32], index: 13, kind: output, shape index: {0}]   ;;  %s1802_s14 = inlined_call_operand.vmem [shape: f32[16,1], index: 14, kind: output, shape index: {1}]  }
   0x1   :  { %1807 = sst [smem:[#allocation8_spill]] %s1788_s0  ;;  %v20_v0 = vstv %s1795_s7 }
   0x2   :  { %1808 = sst [smem:[#allocation9_spill]] %s1789_s1  ;;  %21 = vst [vmem:[#allocation3] sm:$0x1] %v20_v0 }
   0x3   :  { %1809 = sst [smem:[#allocation10_spill]] %s1790_s2 }
   0x4   :  { %1810 = sst [smem:[#allocation11_spill]] %s1791_s3 }
   0x5   :  { %1811 = sst [smem:[#allocation12_spill]] %s1792_s4 }
   0x6   :  { %1812 = sst [smem:[#allocation13_spill]] %s1793_s5 }
   0x7   :  { %22 = vsyncpa [#allocation5], 0 }
   0x8   :  { %24 = vsyncpa [#allocation5 + $0x1], 0  ;;  %s1555_s15 = smov 0   ;;  %s1557_s16 = smov 0  }
   0x9   :  { %s1559_s17 = smov 0   ;;  %s1561_s18 = smov 0  }
   0xa   :  { %s1563_s19 = smov 0   ;;  %s1565_s20 = smov 0  }
   0xb LB: > { %s1171_s7 = sadd.s32 4294967295, %s1469_s20   ;;  %s1172_s21 = sadd.s32 4294967294, %s1469_s20   ;;  %s1469_s20 = sphi %s1565_s20, %s30_s20   ;;  %s1465_s19 = sphi %s1563_s19, %s1830_s19   ;;  %s1461_s18 = sphi %s1561_s18, %s1829_s18   ;;  %s1457_s17 = sphi %s1559_s17, %s1828_s17   ;;  %s1453_s16 = sphi %s1557_s16, %s1827_s16   ;;  %s1449_s15 = sphi %s1555_s15, %s1826_s15  }
   0xc   : > { %s42_s22 = sadd.s32 1, %s1465_s19  ;;  %s337_s23 = sadd.s32 1, %s1457_s17 }
   0xd   : > { %p44_p0 = scmp.ge.s32.totalorder %s42_s22, 2  ;;  %p347_p1 = scmp.ne.s32.totalorder %s1457_s17, %s1453_s16 }
   0xe   : > { %p348_p2 = scmp.eq.s32.totalorder %s1171_s7, 1  ;;  %p353_p3 = scmp.ne.s32.totalorder %s1453_s16, %s1449_s15 }
   0xf   : > { %s1832_s22 = smov (%p44_p0, %s42_s22), 0  ;;  %p354_p5 = scmp.eq.s32.totalorder %s1172_s21, 1 }
  0x10   : > { %1813 = sst [smem:[#allocation7_spill]] %s1832_s22  ;;  %p1595_p4 = por %p348_p2, %p347_p1 }
  0x11   : > { %s334_s25 = ssub.s32 %s1465_s19, %s1832_s22  ;;  %p1177_p6 = scmp.ge.s32.totalorder %s1469_s20, 1 }
  0x12   : > { %p335_p7 = scmp.eq.s32.totalorder %s334_s25, 0  ;;  %p1602_p8 = por %p354_p5, %p353_p3 }
  0x13   : > { %p450_p9 = scmp.lt.s32.totalorder %s1469_s20, 3 }
  0x14   : > { %s1608_s27 = scalar_select %p335_p7, %s1457_s17, %s337_s23  }
  0x15   : > { %p451_p10 = pnand %p1177_p6, %p450_p9 }
  0x16   : > { %s1816_s1 = sld [smem:[#allocation9_spill]] (!%p451_p10)  ;;  %v1471_v2 = vmov (!%p451_p10), 0.0   ;;  %vm1472_vm0 = vmmov (!%p451_p10), 0   ;;  %vm529_vm1 = vcmask (!%p451_p10), 261120   ;;  %v532_v7 = vlaneseq (!%p451_p10)  ;;  %s1181_s7 = sshll.u32 (!%p451_p10), %s1461_s18, 3  ;;  %v1371_v33 = vld [vmem:[%s1794_s6] sm:$0xff] (!%p451_p10)  }
  0x17   : > { %454 = sbr.rel (%p451_p10) target bundleno = 1682 (0x692), region = 72  ;;  %1242 = vmatprep.subr.bf16.mxu0 (!%p451_p10), %v1471_v2  ;;  %1262 = vmatprep.subr.bf16.mxu1 (!%p451_p10), %v1471_v2  ;;  %530 = vst.msk [vmem:[#allocation2] sm:$0xff] (!%p451_p10), %vm529_vm1, %v1471_v2  ;;  %v534_v10 = vstv (!%p451_p10), %s1181_s7  ;;  %s1817_s0 = sld [smem:[#allocation8_spill]] (!%p451_p10)  ;;  %v1473_v15 = vmov (!%p451_p10), 1.0|1.0   ;;  %vm724_vm4 = vcmask (!%p451_p10), 1041408  }
  0x18   : > { %1258 = vmatprep.mubr.msk.bf16.mxu0 (!%p451_p10), %vm1472_vm0, %v1471_v2  ;;  %1266 = vmatprep.mubr.msk.bf16.mxu1 (!%p451_p10), %vm1472_vm0, %v1471_v2  ;;  %v533_v9 = vshrl.u32 (!%p451_p10), %v532_v7, 7  ;;  %s1818_s4 = sld [smem:[#allocation12_spill]] (!%p451_p10)  ;;  %p516_p11 = scmp.lt.s32.totalorder (!%p451_p10), %s1461_s18, 1  ;;  %vm725_vm5 = vcmask (!%p451_p10), 1042432   ;;  %v1474_v24 = vmov (!%p451_p10), 65535   ;;  %vm720_vm6 = vcmask (!%p451_p10), 39936  }
  0x19   : > { %v726_v25 = vsel (!%p451_p10), %vm724_vm4, 4294967295, %v1474_v24  ;;  %s1819_s3 = sld [smem:[#allocation11_spill]] (!%p451_p10)  ;;  %s1820_s2 = sld [smem:[#allocation10_spill]] (!%p451_p10)  ;;  %v1372_v34 = vld [vmem:[%s1794_s6 + $0x8] sm:$0xff] (!%p451_p10)   ;;  %v1475_v52 = vmov (!%p451_p10), 0   ;;  %v1373_v53 = vld [vmem:[%s1796_s8] sm:$0xff] (!%p451_p10)  }
  0x1a   : > { %v535_v12 = vadd.s32 (!%p451_p10), %v534_v10, %v533_v9  ;;  %v727_v27 = vsel (!%p451_p10), %vm725_vm5, %v726_v25, 0  ;;  %s1821_s5 = sld [smem:[#allocation13_spill]] (!%p451_p10)  ;;  %s1805_s25 = sand.u32 (!%p451_p10), 1, %s1453_s16   ;;  %1360 = vset.pattern.permute.xlu0 (!%p451_p10), %v1475_v52  ;;  %v1200_v54 = vld [vmem:[#allocation3] ss:$0 sm:$0xff] (!%p451_p10) }
  0x1b   : > { %s1698_s29 = sshll.u32 (!%p451_p10), %s1805_s25, 3  ;;  %v1374_v0 = vld [vmem:[%s1796_s8 + $0x8] sm:$0xff] (!%p451_p10)   ;;  %s1216_s7 = sshll.u32 (!%p451_p10), %s1461_s18, 7 }
  0x1c   : > { %v1361_v1 = vld [vmem:[%s1816_s1] sm:$0xff] (!%p451_p10)   ;;  %v1362_v3 = vld [vmem:[%s1816_s1 + $0x8] sm:$0xff] (!%p451_p10)   ;;  %v1363_v4 = vld [vmem:[%s1816_s1 + $0x10] sm:$0xff] (!%p451_p10)   ;;  %s1806_s30 = scalar_lea.vmem (!%p451_p10), [#allocation4], %s1698_s29  ;;  %s1822_s23 = scalar_lea.vmem (!%p451_p10), [#allocation4], %s1698_s29 }
  0x1d   : > { %1243 = vmatpush3.bf16.msra.mxu0 (!%p451_p10), %v1361_v1  ;;  %v1364_v5 = vld [vmem:[%s1816_s1 + $0x18] sm:$0xff] (!%p451_p10)   ;;  %v1365_v6 = vld [vmem:[%s1816_s1 + $0x20] sm:$0xff] (!%p451_p10)   ;;  %v1366_v8 = vld [vmem:[%s1816_s1 + $0x28] sm:$0xff] (!%p451_p10)   ;;  %s1823_s25 = sand.u32 (!%p451_p10), 1, %s1453_s16  }
  0x1e   : > { %1244 = vmatprep.subr.bf16.mxu0 %v1471_v2  ;;  %v1367_v11 = vld [vmem:[%s1816_s1 + $0x30] sm:$0xff]   ;;  %v1182_v13 = vld [vmem:[%s1817_s0] ss:$0 sm:$0xff]  ;;  %v1368_v14 = vld [vmem:[%s1816_s1 + $0x38] sm:$0xff]   ;;  %s1667_s28 = scalar_select %p516_p11, %s1461_s18, 1 }
  0x1f   : > { %vm541_vm2 = vcmp.eq.s32.totalorder %v535_v12, %v1182_v13  ;;  %v1369_v16 = vld [vmem:[%s1818_s4] sm:$0xff]   ;;  %v1370_v17 = vld [vmem:[%s1818_s4 + $0x8] sm:$0xff]   ;;  %s1050_s0 = sshll.u32 %s1822_s23, 4  ;;  %s1051_s0 = int_to_ptr.vmem [resolvable:$true] %s1050_s0 }
  0x20   : > { %vm1192_vm3 = vmpackc.low %vm541_vm2, %vm541_vm2  ;;  %1263 = vmatpush3.bf16.msra.mxu1 %v1369_v16  ;;  %v545_v18 = vld [vmem:[#allocation2] sm:$0xff]  ;;  %s1804_s21 = sshll.u32 %s1667_s28, 3  ;;  %s1391_s4 = scalar_lea.vmem %s1051_s0, 128 }
  0x21   : > { %1245 = vmatpush3.bf16.msra.mxu0 %v1362_v3  ;;  %1264 = vmatprep.subr.bf16.mxu1 %v1471_v2  ;;  %v658_v26 = vld [vmem:[%s1819_s3] sm:$0x7]  ;;  %s519_s22 = scalar_lea.vmem %s1820_s2, %s1804_s21  ;;  %s1740_s3 = scalar_lea.hbm %s1801_s13, %s1216_s7 }
  0x22   : > { %1246 = vmatprep.subr.bf16.mxu0 %v1471_v2  ;;  %v729_v29 = vand.u32 %v727_v27, %v658_v26  ;;  %v657_v31 = vld [vmem:[%s519_s22] sm:$0xff]  ;;  %s1033_s21 = scalar_lea.sflag [#allocation5], %s1823_s25  ;;  %p1392_p12 = scmp.ne.s32.totalorder %s1051_s0, %s1391_s4 }
  0x23   : > { %v659_v32 = vpack.c.bf16 %v657_v31, %v657_v31  ;;  %v1198_v40 = vld [vmem:[%s1821_s5] ss:$0 sm:$0xff] }
  0x24   : > { %1265 = vmatpush3.bf16.msra.mxu1 %v1370_v17  ;;  %p1393_p13 = pnand %p1392_p12, %p1595_p4 }
  0x25   : > { %1247 = vmatpush3.bf16.msra.mxu0 %v1363_v4  ;;  %1270 = vmatprep.subr.bf16.mxu1 %v1471_v2 }
  0x26   : > { %1248 = vmatprep.subr.bf16.mxu0 %v1471_v2  ;;  %p1394_p0 = pneg %p1393_p13 }
  0x29   : > { %1249 = vmatpush3.bf16.msra.mxu0 %v1364_v5  ;;  %v1205_v5 = vld [vmem:[%s1797_s9] ss:$0 sm:$0xff] }
  0x2a   : > { %1250 = vmatprep.subr.bf16.mxu0 %v1471_v2 }
  0x2d   : > { %1251 = vmatpush3.bf16.msra.mxu0 %v1365_v6 }
  0x2e   : > { %1252 = vmatprep.subr.bf16.mxu0 %v1471_v2 }
  0x31   : > { %1253 = vmatpush3.bf16.msra.mxu0 %v1366_v8 }
  0x32   : > { %1254 = vmatprep.subr.bf16.mxu0 %v1471_v2 }
  0x35   : > { %1255 = vmatpush3.bf16.msra.mxu0 %v1367_v11 }
  0x36   : > { %1256 = vmatprep.subr.bf16.mxu0 %v1471_v2 }
  0x39   : > { %1257 = vmatpush3.bf16.msra.mxu0 %v1368_v14 }
  0x3a   : > { %1292 = vmatprep.subr.bf16.mxu0 %v1471_v2 }
  0x3c   : > { %1259 = vmatmul.mubr.msk.bf16.vlgmr.msra.gmra.mrb[0].mxu0 %vm1192_vm3, %v1473_v15 }
  0x3d   : > { %1296 = vmatprep.mubr.msk.bf16.mxu0 %vm1472_vm0, %v1471_v2 }
 0x10f   : > { %v644_v19 = vpop.f32.mrb[0].mxu0 }
 0x110   : > { %v650_v20 = vadd.f32 %v644_v19, %v545_v18  ;;  %v1260_v21 = vpop.f32.mrb[1].mxu0 }
 0x111   : > { %v647_v22 = vpop.f32.mrb[2].mxu0 }
 0x112   : > { %652 = vst.msk [vmem:[#allocation2] sm:$0xff] %vm529_vm1, %v650_v20  ;;  %v1261_v23 = vpop.f32.mrb[3].mxu0  ;;  %v1375_v22 = vld [vmem:[%s1800_s12] sm:$0xff]  }
 0x113   : > { %1293 = vmatpush3.bf16.msra.mxu0 %v1375_v22  ;;  %v1376_v23 = vld [vmem:[%s1800_s12 + $0x8] sm:$0xff]  }
 0x114   : > { %1294 = vmatprep.subr.bf16.mxu0 %v1471_v2 }
 0x117   : > { %1295 = vmatpush3.bf16.msra.mxu0 %v1376_v23 }
 0x119   : > { %v656_v28 = vld [vmem:[#allocation2] sm:$0xff] }
 0x11a   : > { %v664_v30 = vpack.c.bf16 %v656_v28, %v656_v28  ;;  %v1210_v28 = vld [vmem:[%s1798_s10] ss:$0 sm:$0xff] }
 0x11c   : > { %1267 = vmatmul.mubr.msk.bf16.vlgmr.msra.gmra.mrb[0].mxu1 %vm529_vm1, %v664_v30 }
 0x11d   : > { %1271 = vmatpush3.bf16.msra.mxu1 %v729_v29  ;;  %1272 = vmatprep.mubr.msk.bf16.mxu1 %vm1472_vm0, %v1471_v2 }
 0x11e   : > { %1276 = vmatprep.subr.bf16.mxu1 %v1471_v2 }
 0x124   : > { %1273 = vmatmul.mubr.msk.bf16.vlgmr.msra.gmra.mrb[4].mxu1 %vm720_vm6, %v659_v32 }
 0x125   : > { %1280 = vmatprep.mubr.msk.bf16.mxu1 %vm1472_vm0, %v1471_v2  ;;  %1277 = vmatpush3.bf16.msra.mxu1 %v1371_v33 }
 0x126   : > { %1278 = vmatprep.subr.bf16.mxu1 %v1471_v2 }
 0x129   : > { %1279 = vmatpush3.bf16.msra.mxu1 %v1372_v34 }
 0x12a   : > { %1284 = vmatprep.subr.bf16.mxu1 %v1471_v2 }
 0x1ef   : > { %v714_v35 = vpop.f32.mrb[0].mxu1 }
 0x1f0   : > { %v1268_v36 = vpop.f32.mrb[1].mxu1 }
 0x1f1   : > { %v717_v37 = vpop.f32.mrb[2].mxu1 }
 0x1f2   : > { %v1269_v38 = vpop.f32.mrb[3].mxu1 }
 0x1f7   : > { %v765_v39 = vpop.f32.mrb[4].mxu1 }
 0x1f8   : > { %v766_v41 = vadd.f32 %v765_v39, %v714_v35  ;;  %v1274_v42 = vpop.f32.mrb[5].mxu1 }
 0x1f9   : > { %v768_v43 = vpop.f32.mrb[6].mxu1 }
 0x1fa   : > { %v778_v44 = vadd.f32 %v1198_v40, %v766_v41  ;;  %v1275_v45 = vpop.f32.mrb[7].mxu1 }
 0x1fc   : > { %v1199_v46 = vmul.f32 -1.442695, %v778_v44 }
 0x1fe   : > { %1377 = vpow2.f32 %v1199_v46 }
 0x208   : > { %v1378_v47 = vpop.eup %1377 }
 0x209   : > { %v782_v48 = vadd.f32 1.0, %v1378_v47 }
 0x20b   : > { %1379 = vrcp.f32 %v782_v48 }
 0x215   : > { %v1380_v49 = vpop.eup %1379 }
 0x216   : > { %v785_v50 = vmul.f32 %v1380_v49, %v778_v44 }
 0x218   : > { %v790_v51 = vpack.c.bf16 %v785_v50, %v785_v50  ;;  %1029 = vst.msk [vmem:[%s1806_s30] sm:$0xff] %vm529_vm1, %v785_v50  ;;  %s1476_s30 = smov [#allocation4]  }
 0x219   : > { %s1395_s22 = sshll.u32 %s1476_s30, 4  ;;  %s1396_s22 = int_to_ptr.vmem [resolvable:$false] %s1395_s22 }
 0x21a   : > { %1281 = vmatmul.mubr.msk.bf16.vlgmr.msra.gmra.mrb[8].mxu1 %vm529_vm1, %v790_v51  ;;  %s1397_s5 = scalar_lea.vmem %s1396_s22, 256  ;;  %p1398_p1 = scmp.lt.s32.totalorder %s1051_s0, %s1396_s22 }
 0x21b   : > { %1288 = vmatprep.mubr.msk.bf16.mxu1 %vm1472_vm0, %v1471_v2  ;;  %1285 = vmatpush3.bf16.msra.mxu1 %v1373_v53  ;;  %p1399_p2 = scmp.lt.s32.totalorder %s1397_s5, %s1391_s4 }
 0x21c   : > { %1286 = vmatprep.subr.bf16.mxu1 %v1471_v2  ;;  %v1211_v2 = vld [vmem:[%s1799_s11] ss:$0 sm:$0xff] }
 0x21d   : > { %p1400_p3 = por %p1399_p2, %p1398_p1 }
 0x21f   : > { %1287 = vmatpush3.bf16.msra.mxu1 %v1374_v0  ;;  %p1401_p5 = pnand %p1400_p3, %p1394_p0 }
 0x2ed   : > { %v847_v55 = vpop.f32.mrb[8].mxu1 }
 0x2ee   : > { %v848_v56 = vadd.f32 %v1200_v54, %v847_v55  ;;  %v1282_v57 = vpop.f32.mrb[9].mxu1 }
 0x2ef   : > { %v850_v58 = vpop.f32.mrb[10].mxu1 }
 0x2f0   : > { %v1204_v59 = vmul.f32 -1.442695, %v848_v56  ;;  %v1283_v60 = vpop.f32.mrb[11].mxu1 }
 0x2f2   : > { %1381 = vpow2.f32 %v1204_v59 }
 0x2fc   : > { %v1382_v61 = vpop.eup %1381 }
 0x2fd   : > { %v856_v62 = vadd.f32 1.0, %v1382_v61 }
 0x2ff   : > { %1383 = vrcp.f32 %v856_v62 }
 0x309   : > { %v1384_v63 = vpop.eup %1383 }
 0x30a   : > { %861 = vperm.xlu0 %1360, %v1384_v63  }
 0x389   : > { %v862_v1 = vpop.permute.xlu0 %861 }
 0x38a   : > { %v864_v3 = vmul.f32 %v862_v1, %v785_v50 }
 0x38c   : > { %v869_v4 = vpack.c.bf16 %v864_v3, %v864_v3 }
 0x38e   : > { %1289 = vmatmul.mubr.msk.bf16.vlgmr.msra.gmra.mrb[12].mxu1 %vm529_vm1, %v869_v4 }
 0x461   : > { %v926_v6 = vpop.f32.mrb[12].mxu1 }
 0x462   : > { %v927_v7 = vadd.f32 %v1205_v5, %v926_v6  ;;  %v1290_v8 = vpop.f32.mrb[13].mxu1 }
 0x463   : > { %v929_v9 = vpop.f32.mrb[14].mxu1 }
 0x464   : > { %v1209_v10 = vmul.f32 -1.442695, %v927_v7  ;;  %v1291_v11 = vpop.f32.mrb[15].mxu1 }
 0x466   : > { %1385 = vpow2.f32 %v1209_v10 }
 0x470   : > { %v1386_v12 = vpop.eup %1385 }
 0x471   : > { %v935_v13 = vadd.f32 1.0, %v1386_v12 }
 0x473   : > { %1387 = vrcp.f32 %v935_v13 }
 0x47d   : > { %v1388_v14 = vpop.eup %1387 }
 0x47e   : > { %v938_v15 = vmul.f32 %v1388_v14, %v927_v7 }
 0x480   : > { %v941_v16 = vsel %vm529_vm1, %v938_v15, 0.0 }
 0x481   : > { %942 = vadd.xlane.f32.xlu0 %v941_v16 }
 0x50e   : > { %v943_v17 = vpop.xlane.xlu0 %942 }
 0x50f   : > { %v945_v18 = vmul.f32 0.03125, %v943_v17 }
 0x511   : > { %v946_v19 = vsub.f32 %v938_v15, %v945_v18 }
 0x513   : > { %v947_v20 = vmul.f32 %v946_v19, %v946_v19 }
 0x515   : > { %v948_v21 = vsel %vm529_vm1, %v947_v20, 0.0 }
 0x516   : > { %949 = vadd.xlane.f32.xlu1 %v948_v21 }
 0x5a3   : > { %v950_v24 = vpop.xlane.xlu1 %949 }
 0x5a4   : > { %v951_v25 = vmul.f32 0.03125, %v950_v24 }
 0x5a6   : > { %v952_v26 = vadd.f32 1e-05, %v951_v25 }
 0x5a8   : > { %1389 = vrsqrt.f32 %v952_v26 }
 0x5b2   : > { %v1390_v27 = vpop.eup %1389 }
 0x5b3   : > { %v954_v29 = vmul.f32 %v1390_v27, %v946_v19 }
 0x5b5   : > { %v961_v30 = vmul.f32 %v1210_v28, %v954_v29 }
 0x5b7   : > { %v968_v31 = vadd.f32 %v1211_v2, %v961_v30 }
 0x5b9   : > { %v973_v32 = vpack.c.bf16 %v968_v31, %v968_v31 }
 0x5bb   : > { %1297 = vmatmul.mubr.msk.bf16.vlgmr.msra.gmra.mrb[4].mxu0 %vm529_vm1, %v973_v32 }
 0x5bc   : > { %1404 = shalt.err (!%p1401_p5)
}
 0x5bd   : > { %s1405_s1 = scalar_lea.hbm %s1740_s3, 128  ;;  %s1409_s29 = scalar_lea.hbm %s1801_s13, 256 }
 0x5be   : > { %p1406_p6 = scmp.ne.s32.totalorder %s1740_s3, %s1405_s1  ;;  %p1410_p10 = scmp.lt.u32.totalorder %s1740_s3, %s1801_s13 }
 0x5bf   : > { %p1411_p11 = scmp.lt.u32.totalorder %s1409_s29, %s1405_s1  ;;  %p1413_p13 = scmp.lt.u32.totalorder %s1405_s1, %s1740_s3 }
 0x5c0   : > { %p1407_p7 = pnand %p1406_p6, %p1595_p4 }
 0x5c1   : > { %p1412_p12 = por %p1411_p11, %p1410_p10 }
 0x5c2   : > { %p1408_p9 = pneg %p1407_p7 }
 0x5c3   : > { %p1414_p0 = por %p1413_p13, %p1412_p12 }
 0x5c5   : > { %p1415_p1 = pnand %p1414_p0, %p1408_p9 }
 0x5c7   : > { %1418 = shalt.err (!%p1415_p1)
}
 0x5c8   : > { %1300 = dma.vmem_to_hbm [thread:$0]  (%p1595_p4), %s1051_s0, 128, %s1740_s3, %s1033_s21   ;;  %vm1030_vm7 = vcmask 7168  }
 0x5c9   : > { %s1824_s4 = sshll.u32 %s1667_s28, 3 }
 0x5ca   : > { %s523_s30 = scalar_lea.vmem %s1802_s14, %s1824_s4 }
 0x68e   : > { %v1023_v33 = vpop.f32.mrb[4].mxu0 }
 0x68f   : > { %1031 = vst.msk [vmem:[%s523_s30] sm:$0xff] %vm1030_vm7, %v1023_v33  ;;  %v1298_v34 = vpop.f32.mrb[5].mxu0 }
 0x690   : > { %v1026_v35 = vpop.f32.mrb[6].mxu0 }
 0x691   : > { %v1299_v36 = vpop.f32.mrb[7].mxu0 }
 0x692 PF: > { %p1306_p2 = scmp.ge.s32.totalorder %s1469_s20, 2  ;;  %s1065_s24 = sand.u32 1, %s1449_s15  }
 0x693   : > { %s1066_s0 = scalar_lea.sflag [#allocation5], %s1065_s24 }
 0x694   : > { %p1303_p3 = pnand %p1306_p2, %p1602_p8 }
 0x696   : > { %1444 = dma.done.wait (!%p1303_p3), %s1066_s0, 128  }
 0x697   : > { %1446 = vsyncadd (!%p1303_p3), %s1066_s0, 4294967168  ;;  %s30_s20 = sadd.s32 1, %s1469_s20   ;;  %s1825_s3 = sld [smem:[#allocation7_spill]] }
 0x698   : > { %p27_p4 = scmp.ge.s32.totalorder %s30_s20, 4   ;;  %s1826_s15 = smov %s1453_s16 }
 0x699   : > { %s1827_s16 = smov %s1457_s17  ;;  %s1828_s17 = smov %s1608_s27 }
 0x69a   : > { %s1829_s18 = smov %s1465_s19  ;;  %29 = sbr.rel (!%p27_p4) target bundleno = 11 (0xb), region = 133 }
 0x69d   : > { %s1830_s19 = smov %s1825_s3 }
 0x6a1   :  { %1078 = vsyncpa [#allocation5], 1 }
 0x6a2   :  { %1080 = vsyncpa [#allocation5 + $0x1], 1 }

// kernel: energy_block_forward.2
= control target key start
LH: loop header
LB: loop body
LE: loop exit
PB: predicated region body
PF: predicated region fallthrough
CT: control target
= control target key end

     0   :  { %vm84_vm0 = vcmask 326656   ;;  %vm109_vm1 = vcmask 1043456   ;;  %vm324_vm2 = vcmask 523264   ;;  %vm860_vm3 = vcmask 261120   ;;  %s2366_s1 = inlined_call_operand.vmem [shape: bf16[40,64], index: 1, kind: input, shape index: {}]   ;;  %s2367_s0 = inlined_call_operand.vmem [shape: f32[128,40], index: 0, kind: input, shape index: {}]   ;;  %s2368_s2 = inlined_call_operand.vmem [shape: f32[1,64], index: 2, kind: input, shape index: {}]   ;;  %s2369_s5 = inlined_call_operand.vmem [shape: bf16[64,32], index: 5, kind: input, shape index: {}]   ;;  %s2370_s3 = inlined_call_operand.vmem [shape: f32[1,64], index: 3, kind: input, shape index: {}]   ;;  %s2371_s4 = inlined_call_operand.vmem [shape: f32[1,64], index: 4, kind: input, shape index: {}]   ;;  %s2372_s6 = inlined_call_operand.vmem [shape: f32[1,32], index: 6, kind: input, shape index: {}]   ;;  %s2373_s7 = inlined_call_operand.vmem [shape: f32[1,32], index: 7, kind: input, shape index: {}]   ;;  %s2374_s8 = inlined_call_operand.vmem [shape: f32[1,32], index: 8, kind: input, shape index: {}]   ;;  %s2375_s9 = inlined_call_operand.vmem [shape: bf16[128,32], index: 9, kind: output, shape index: {}]  }
   0x1   :  { %v1362_v0 = vld [vmem:[%s2366_s1] sm:$0xff]   ;;  %v1363_v1 = vld [vmem:[%s2366_s1 + $0x8] sm:$0xff]   ;;  %v1364_v4 = vld [vmem:[%s2366_s1 + $0x10] ss:$0 sps:$4 sm:$0xff]   ;;  %vm1178_vm4 = vcmask 257024  }
   0x2   :  { %1315 = vmatprep.subr.bf16.mxu0 %v1362_v0  ;;  %v33_v2 = vld [vmem:[%s2367_s0] sm:$0xff]  ;;  %v34_v3 = vld [vmem:[%s2367_s0 + $0x8] sm:$0xff]  ;;  %v35_v6 = vld [vmem:[%s2367_s0 + $0x10] sm:$0xff]  ;;  %v111_v8 = vsel %vm109_vm1, %v1364_v4, 0 }
   0x3   :  { %1316 = vmatpush3.bf16.msra.mxu0 %v1362_v0  ;;  %v54_v5 = vpack.c.bf16 %v34_v3, %v33_v2  ;;  %v36_v7 = vld [vmem:[%s2367_s0 + $0x18] sm:$0xff]  ;;  %v37_v9 = vld [vmem:[%s2367_s0 + $0x20] sm:$0xff]  ;;  %v38_v10 = vld [vmem:[%s2367_s0 + $0x28] sm:$0xff] }
   0x4   :  { %1317 = vmatprep.subr.bf16.mxu0 %v1363_v1  ;;  %v55_v11 = vpack.c.bf16 %v36_v7, %v35_v6  ;;  %v56_v12 = vpack.c.bf16 %v38_v10, %v37_v9  ;;  %v39_v13 = vld [vmem:[%s2367_s0 + $0x30] sm:$0xff]  ;;  %v40_v14 = vld [vmem:[%s2367_s0 + $0x38] sm:$0xff]  ;;  %v41_v15 = vld [vmem:[%s2367_s0 + $0x40] sm:$0xff] }
   0x5   :  { %1321 = vmatprep.mubr.msk.bf16.mxu0 %vm84_vm0, %v54_v5  ;;  %v42_v16 = vld [vmem:[%s2367_s0 + $0x48] sm:$0xff]  ;;  %v57_v17 = vpack.c.bf16 %v40_v14, %v39_v13  ;;  %v43_v19 = vld [vmem:[%s2367_s0 + $0x50] sm:$0xff]  ;;  %v44_v20 = vld [vmem:[%s2367_s0 + $0x58] sm:$0xff] }
   0x6   :  { %v58_v18 = vpack.c.bf16 %v42_v16, %v41_v15  ;;  %v45_v21 = vld [vmem:[%s2367_s0 + $0x60] sm:$0xff]  ;;  %v46_v22 = vld [vmem:[%s2367_s0 + $0x68] sm:$0xff]  ;;  %v59_v23 = vpack.c.bf16 %v44_v20, %v43_v19  ;;  %v47_v25 = vld [vmem:[%s2367_s0 + $0x70] sm:$0xff] }
   0x7   :  { %1318 = vmatpush3.bf16.msra.mxu0 %v1363_v1  ;;  %v60_v24 = vpack.c.bf16 %v46_v22, %v45_v21  ;;  %v48_v26 = vld [vmem:[%s2367_s0 + $0x78] sm:$0xff]  ;;  %v1679_v28 = vld [vmem:[%s2368_s2] ss:$0 sm:$0xff] }
   0x8   :  { %1361 = vmatprep.subr.msk.bf16.mxu0 %vm109_vm1, %v1364_v4  ;;  %v61_v27 = vpack.c.bf16 %v48_v26, %v47_v25 }
   0xb   :  { %1320 = vmatpush3.bf16.msra.mxu0 %v111_v8 }
   0xe   :  { %1322 = vmatmul.mubr.msk.bf16.vlgmr.msra.gmra.mrb[0].mxu0 %vm84_vm0, %v55_v11 }
   0xf   :  { %1325 = vmatprep.mubr.msk.bf16.mxu0 %vm84_vm0, %v56_v12 }
  0x16   :  { %1326 = vmatmul.mubr.msk.bf16.gmra.mrb[4].mxu0 %vm84_vm0, %v57_v17 }
  0x17   :  { %1329 = vmatprep.mubr.msk.bf16.mxu0 %vm84_vm0, %v58_v18 }
  0x1e   :  { %1330 = vmatmul.mubr.msk.bf16.gmra.mrb[8].mxu0 %vm84_vm0, %v59_v23 }
  0x1f   :  { %1333 = vmatprep.mubr.msk.bf16.mxu0 %vm84_vm0, %v60_v24 }
  0x26   :  { %1334 = vmatmul.mubr.msk.bf16.gmra.mrb[12].mxu0 %vm84_vm0, %v61_v27 }
  0xe1   :  { %v1323_v29 = vpop.f32.mrb[0].mxu0 }
  0xe2   :  { %v1682_v30 = vadd.f32 %v1323_v29, %v1679_v28  ;;  %v147_v31 = vpop.f32.mrb[1].mxu0 }
  0xe3   :  { %v1685_v32 = vadd.f32 %v1679_v28, %v147_v31  ;;  %v1324_v33 = vpop.f32.mrb[2].mxu0 }
  0xe4   :  { %v1213_v34 = vmul.f32 -1.442695, %v1682_v30  ;;  %v1689_v35 = vadd.f32 %v1324_v33, %v1679_v28  ;;  %v150_v36 = vpop.f32.mrb[3].mxu0 }
  0xe5   :  { %v1211_v37 = vmul.f32 -1.442695, %v1685_v32  ;;  %v1693_v38 = vadd.f32 %v1679_v28, %v150_v36 }
  0xe6   :  { %1369 = vpow2.f32 %v1213_v34  ;;  %v1214_v39 = vmul.f32 -1.442695, %v1689_v35 }
  0xe7   :  { %1371 = vpow2.f32 %v1211_v37  ;;  %v1212_v40 = vmul.f32 -1.442695, %v1693_v38 }
  0xe8   :  { %1373 = vpow2.f32 %v1214_v39 }
  0xe9   :  { %1375 = vpow2.f32 %v1212_v40  ;;  %v1327_v41 = vpop.f32.mrb[4].mxu0 }
  0xea   :  { %v1698_v42 = vadd.f32 %v1327_v41, %v1679_v28  ;;  %v163_v43 = vpop.f32.mrb[5].mxu0 }
  0xeb   :  { %v1701_v44 = vadd.f32 %v1679_v28, %v163_v43  ;;  %v1328_v45 = vpop.f32.mrb[6].mxu0 }
  0xec   :  { %v1217_v46 = vmul.f32 -1.442695, %v1698_v42  ;;  %v1705_v47 = vadd.f32 %v1328_v45, %v1679_v28  ;;  %v166_v48 = vpop.f32.mrb[7].mxu0 }
  0xed   :  { %v1215_v49 = vmul.f32 -1.442695, %v1701_v44  ;;  %v1709_v50 = vadd.f32 %v1679_v28, %v166_v48 }
  0xee   :  { %1377 = vpow2.f32 %v1217_v46  ;;  %v1218_v51 = vmul.f32 -1.442695, %v1705_v47 }
  0xef   :  { %1379 = vpow2.f32 %v1215_v49  ;;  %v1216_v52 = vmul.f32 -1.442695, %v1709_v50 }
  0xf0   :  { %v1370_v53 = vpop.eup %1369  ;;  %1381 = vpow2.f32 %v1218_v51 }
  0xf1   :  { %v1372_v54 = vpop.eup %1371  ;;  %v260_v55 = vadd.f32 1.0, %v1370_v53  ;;  %1383 = vpow2.f32 %v1216_v52  ;;  %v1331_v56 = vpop.f32.mrb[8].mxu0 }
  0xf2   :  { %v1374_v57 = vpop.eup %1373  ;;  %v258_v58 = vadd.f32 1.0, %v1372_v54  ;;  %v1714_v59 = vadd.f32 %v1331_v56, %v1679_v28  ;;  %v179_v60 = vpop.f32.mrb[9].mxu0 }
  0xf3   :  { %v1376_v61 = vpop.eup %1375  ;;  %1385 = vrcp.f32 %v260_v55  ;;  %v261_v62 = vadd.f32 1.0, %v1374_v57  ;;  %v1717_v63 = vadd.f32 %v1679_v28, %v179_v60  ;;  %v1332_v0 = vpop.f32.mrb[10].mxu0 }
  0xf4   :  { %1387 = vrcp.f32 %v258_v58  ;;  %v259_v1 = vadd.f32 1.0, %v1376_v61  ;;  %v1221_v2 = vmul.f32 -1.442695, %v1714_v59  ;;  %v1721_v3 = vadd.f32 %v1332_v0, %v1679_v28  ;;  %v182_v4 = vpop.f32.mrb[11].mxu0 }
  0xf5   :  { %1389 = vrcp.f32 %v261_v62  ;;  %v1219_v5 = vmul.f32 -1.442695, %v1717_v63  ;;  %v1725_v6 = vadd.f32 %v1679_v28, %v182_v4 }
  0xf6   :  { %1391 = vrcp.f32 %v259_v1  ;;  %v1222_v7 = vmul.f32 -1.442695, %v1721_v3 }
  0xf7   :  { %1393 = vpow2.f32 %v1221_v2  ;;  %v1220_v8 = vmul.f32 -1.442695, %v1725_v6 }
  0xf8   :  { %v1378_v9 = vpop.eup %1377  ;;  %1395 = vpow2.f32 %v1219_v5 }
  0xf9   :  { %v1380_v10 = vpop.eup %1379  ;;  %v264_v11 = vadd.f32 1.0, %v1378_v9  ;;  %1397 = vpow2.f32 %v1222_v7  ;;  %v1335_v12 = vpop.f32.mrb[12].mxu0 }
  0xfa   :  { %v1382_v13 = vpop.eup %1381  ;;  %v262_v14 = vadd.f32 1.0, %v1380_v10  ;;  %1399 = vpow2.f32 %v1220_v8  ;;  %v1730_v15 = vadd.f32 %v1335_v12, %v1679_v28  ;;  %v195_v16 = vpop.f32.mrb[13].mxu0 }
  0xfb   :  { %v1384_v17 = vpop.eup %1383  ;;  %1401 = vrcp.f32 %v264_v11  ;;  %v265_v18 = vadd.f32 1.0, %v1382_v13  ;;  %v1733_v19 = vadd.f32 %v1679_v28, %v195_v16  ;;  %v1336_v20 = vpop.f32.mrb[14].mxu0 }
  0xfc   :  { %1403 = vrcp.f32 %v262_v14  ;;  %v263_v21 = vadd.f32 1.0, %v1384_v17  ;;  %v1225_v22 = vmul.f32 -1.442695, %v1730_v15  ;;  %v1737_v23 = vadd.f32 %v1336_v20, %v1679_v28  ;;  %v198_v24 = vpop.f32.mrb[15].mxu0 }
  0xfd   :  { %v1386_v25 = vpop.eup %1385  ;;  %1405 = vrcp.f32 %v265_v18  ;;  %v1223_v26 = vmul.f32 -1.442695, %v1733_v19  ;;  %v1741_v27 = vadd.f32 %v1679_v28, %v198_v24 }
  0xfe   :  { %v1388_v29 = vpop.eup %1387  ;;  %1407 = vrcp.f32 %v263_v21  ;;  %v1226_v31 = vmul.f32 -1.442695, %v1737_v23  ;;  %v1745_v33 = vmul.f32 %v1386_v25, %v1682_v30 }
  0xff   :  { %v1390_v34 = vpop.eup %1389  ;;  %1409 = vpow2.f32 %v1225_v22  ;;  %v1224_v36 = vmul.f32 -1.442695, %v1741_v27  ;;  %v1749_v37 = vmul.f32 %v1388_v29, %v1685_v32 }
 0x100   :  { %v1392_v39 = vpop.eup %1391  ;;  %1411 = vpow2.f32 %v1223_v26  ;;  %v331_v28 = vsel %vm324_vm2, %v1745_v33, 0.0  ;;  %v1754_v40 = vmul.f32 %v1390_v34, %v1689_v35 }
 0x101   :  { %v1394_v41 = vpop.eup %1393  ;;  %1413 = vpow2.f32 %v1226_v31  ;;  %332 = vadd.xlane.f32.xlu1 %v331_v28  ;;  %v325_v30 = vsel %vm324_vm2, %v1749_v37, 0.0  ;;  %v1759_v43 = vmul.f32 %v1392_v39, %v1693_v38 }
 0x102   :  { %v1396_v45 = vpop.eup %1395  ;;  %v268_v32 = vadd.f32 1.0, %v1394_v41  ;;  %1415 = vpow2.f32 %v1224_v36  ;;  %326 = vadd.xlane.f32.xlu0 %v325_v30  ;;  %v334_v35 = vsel %vm324_vm2, %v1754_v40, 0.0 }
 0x103   :  { %v1398_v46 = vpop.eup %1397  ;;  %v266_v48 = vadd.f32 1.0, %v1396_v45  ;;  %v328_v38 = vsel %vm324_vm2, %v1759_v43, 0.0 }
 0x104   :  { %v1400_v49 = vpop.eup %1399  ;;  %1417 = vrcp.f32 %v268_v32  ;;  %v269_v51 = vadd.f32 1.0, %v1398_v46 }
 0x105   :  { %v1402_v52 = vpop.eup %1401  ;;  %1419 = vrcp.f32 %v266_v48  ;;  %v267_v53 = vadd.f32 1.0, %v1400_v49  ;;  %335 = vadd.xlane.f32.xlu1 %v334_v35 }
 0x106   :  { %v1404_v54 = vpop.eup %1403  ;;  %1421 = vrcp.f32 %v269_v51  ;;  %329 = vadd.xlane.f32.xlu0 %v328_v38  ;;  %v1774_v62 = vmul.f32 %v1402_v52, %v1698_v42 }
 0x107   :  { %v1406_v55 = vpop.eup %1405  ;;  %1423 = vrcp.f32 %v267_v53  ;;  %v1766_v56 = vmul.f32 %v1404_v54, %v1701_v44 }
 0x108   :  { %v1408_v57 = vpop.eup %1407  ;;  %v1779_v5 = vmul.f32 %v1406_v55, %v1705_v47  ;;  %v343_v42 = vsel %vm324_vm2, %v1774_v62, 0.0 }
 0x109   :  { %v1410_v58 = vpop.eup %1409  ;;  %v337_v60 = vsel %vm324_vm2, %v1766_v56, 0.0  ;;  %v1771_v61 = vmul.f32 %v1408_v57, %v1709_v50 }
 0x10a   :  { %v1412_v0 = vpop.eup %1411  ;;  %v272_v1 = vadd.f32 1.0, %v1410_v58  ;;  %338 = vadd.xlane.f32.xlu0 %v337_v60  ;;  %v346_v11 = vsel %vm324_vm2, %v1779_v5, 0.0 }
 0x10b   :  { %v1414_v2 = vpop.eup %1413  ;;  %v270_v4 = vadd.f32 1.0, %v1412_v0  ;;  %v340_v44 = vsel %vm324_vm2, %v1771_v61, 0.0 }
 0x10c   :  { %v1416_v7 = vpop.eup %1415  ;;  %1425 = vrcp.f32 %v272_v1  ;;  %v273_v8 = vadd.f32 1.0, %v1414_v2  ;;  %341 = vadd.xlane.f32.xlu1 %v340_v44 }
 0x10d   :  { %1427 = vrcp.f32 %v270_v4  ;;  %v271_v50 = vadd.f32 1.0, %v1416_v7 }
 0x10e   :  { %v1418_v9 = vpop.eup %1417  ;;  %1429 = vrcp.f32 %v273_v8  ;;  %344 = vadd.xlane.f32.xlu0 %v343_v42 }
 0x10f   :  { %v1420_v10 = vpop.eup %1419  ;;  %1431 = vrcp.f32 %v271_v50  ;;  %v1794_v17 = vmul.f32 %v1418_v9, %v1714_v59 }
 0x110   :  { %v1422_v12 = vpop.eup %1421  ;;  %347 = vadd.xlane.f32.xlu1 %v346_v11  ;;  %v1786_v47 = vmul.f32 %v1420_v10, %v1717_v63 }
 0x111   :  { %v1424_v13 = vpop.eup %1423  ;;  %v1799_v20 = vmul.f32 %v1422_v12, %v1721_v3  ;;  %v355_v21 = vsel %vm324_vm2, %v1794_v17, 0.0 }
 0x112   :  { %v349_v14 = vsel %vm324_vm2, %v1786_v47, 0.0  ;;  %v1791_v16 = vmul.f32 %v1424_v13, %v1725_v6 }
 0x113   :  { %350 = vadd.xlane.f32.xlu0 %v349_v14  ;;  %v358_v6 = vsel %vm324_vm2, %v1799_v20, 0.0 }
 0x114   :  { %v352_v18 = vsel %vm324_vm2, %v1791_v16, 0.0 }
 0x115   :  { %353 = vadd.xlane.f32.xlu1 %v352_v18 }
 0x116   :  { %v1426_v63 = vpop.eup %1425 }
 0x117   :  { %v1428_v22 = vpop.eup %1427  ;;  %356 = vadd.xlane.f32.xlu0 %v355_v21  ;;  %v1814_v29 = vmul.f32 %v1426_v63, %v1730_v15 }
 0x118   :  { %v1430_v24 = vpop.eup %1429  ;;  %v1806_v59 = vmul.f32 %v1428_v22, %v1733_v19 }
 0x119   :  { %v1432_v25 = vpop.eup %1431  ;;  %359 = vadd.xlane.f32.xlu1 %v358_v6  ;;  %v1819_v34 = vmul.f32 %v1430_v24, %v1737_v23  ;;  %v367_v19 = vsel %vm324_vm2, %v1814_v29, 0.0 }
 0x11a   :  { %v361_v3 = vsel %vm324_vm2, %v1806_v59, 0.0  ;;  %v1811_v26 = vmul.f32 %v1432_v25, %v1741_v27 }
 0x11b   :  { %362 = vadd.xlane.f32.xlu0 %v361_v3  ;;  %v370_v36 = vsel %vm324_vm2, %v1819_v34, 0.0 }
 0x11c   :  { %v364_v31 = vsel %vm324_vm2, %v1811_v26, 0.0 }
 0x11d   :  { %365 = vadd.xlane.f32.xlu1 %v364_v31 }
 0x11f   :  { %368 = vadd.xlane.f32.xlu0 %v367_v19 }
 0x121   :  { %371 = vadd.xlane.f32.xlu1 %v370_v36 }
 0x18e   :  { %v333_v27 = vpop.xlane.xlu1 %332 }
 0x18f   :  { %v376_v39 = vmul.f32 0.015625, %v333_v27  ;;  %v327_v15 = vpop.xlane.xlu0 %326 }
 0x190   :  { %v374_v28 = vmul.f32 0.015625, %v327_v15 }
 0x191   :  { %v1826_v41 = vsub.f32 %v1745_v33, %v376_v39 }
 0x192   :  { %v1829_v30 = vsub.f32 %v1749_v37, %v374_v28  ;;  %v336_v23 = vpop.xlane.xlu1 %335 }
 0x193   :  { %v377_v45 = vmul.f32 0.015625, %v336_v23  ;;  %v330_v32 = vpop.xlane.xlu0 %329  ;;  %v408_v33 = vmul.f32 %v1826_v41, %v1826_v41 }
 0x194   :  { %v375_v46 = vmul.f32 0.015625, %v330_v32  ;;  %v406_v48 = vmul.f32 %v1829_v30, %v1829_v30 }
 0x195   :  { %v1834_v49 = vsub.f32 %v1754_v40, %v377_v45  ;;  %v428_v55 = vsel %vm324_vm2, %v408_v33, 0.0 }
 0x196   :  { %v1837_v51 = vsub.f32 %v1759_v43, %v375_v46  ;;  %v422_v35 = vsel %vm324_vm2, %v406_v48, 0.0 }
 0x197   :  { %423 = vadd.xlane.f32.xlu0 %v422_v35  ;;  %v339_v37 = vpop.xlane.xlu0 %338  ;;  %v409_v54 = vmul.f32 %v1834_v49, %v1834_v49 }
 0x198   :  { %v378_v52 = vmul.f32 0.015625, %v339_v37  ;;  %v407_v53 = vmul.f32 %v1837_v51, %v1837_v51 }
 0x199   :  { %v342_v38 = vpop.xlane.xlu1 %341  ;;  %v431_v4 = vsel %vm324_vm2, %v409_v54, 0.0 }
 0x19a   :  { %v1847_v40 = vsub.f32 %v1766_v56, %v378_v52  ;;  %v379_v43 = vmul.f32 0.015625, %v342_v38  ;;  %v425_v57 = vsel %vm324_vm2, %v407_v53, 0.0 }
 0x19b   :  { %429 = vadd.xlane.f32.xlu0 %v428_v55  ;;  %426 = vadd.xlane.f32.xlu1 %v425_v57  ;;  %v345_v58 = vpop.xlane.xlu0 %344  ;;  %v1366_v55 = vld [vmem:[%s2369_s5 + $0x8] sm:$0xff]   ;;  %v1367_v57 = vld [vmem:[%s2369_s5 + $0x10] sm:$0xff]  }
 0x19c   :  { %v1852_v60 = vsub.f32 %v1771_v61, %v379_v43  ;;  %v380_v0 = vmul.f32 0.015625, %v345_v58  ;;  %v410_v1 = vmul.f32 %v1847_v40, %v1847_v40  ;;  %v1365_v43 = vld [vmem:[%s2369_s5] sm:$0xff]   ;;  %v1368_v58 = vld [vmem:[%s2369_s5 + $0x18] sm:$0xff]  }
 0x19d   :  { %v348_v2 = vpop.xlane.xlu1 %347  ;;  %1337 = vmatprep.subr.bf16.mxu1 %v1365_v43 }
 0x19e   :  { %v1858_v56 = vsub.f32 %v1774_v62, %v380_v0  ;;  %v381_v44 = vmul.f32 0.015625, %v348_v2  ;;  %v434_v7 = vsel %vm324_vm2, %v410_v1, 0.0  ;;  %v411_v8 = vmul.f32 %v1852_v60, %v1852_v60  ;;  %1338 = vmatpush3.bf16.msra.mxu1 %v1365_v43 }
 0x19f   :  { %432 = vadd.xlane.f32.xlu1 %v431_v4  ;;  %435 = vadd.xlane.f32.xlu0 %v434_v7 }
 0x1a0   :  { %v1864_v61 = vsub.f32 %v1779_v5, %v381_v44  ;;  %v351_v50 = vpop.xlane.xlu0 %350  ;;  %v412_v42 = vmul.f32 %v1858_v56, %v1858_v56  ;;  %v437_v62 = vsel %vm324_vm2, %v411_v8, 0.0  ;;  %1339 = vmatprep.subr.bf16.mxu1 %v1366_v55 }
 0x1a1   :  { %v382_v9 = vmul.f32 0.015625, %v351_v50 }
 0x1a2   :  { %v354_v10 = vpop.xlane.xlu1 %353  ;;  %v440_v11 = vsel %vm324_vm2, %v412_v42, 0.0  ;;  %v413_v12 = vmul.f32 %v1864_v61, %v1864_v61  ;;  %1340 = vmatpush3.bf16.msra.mxu1 %v1366_v55 }
 0x1a3   :  { %v1873_v13 = vsub.f32 %v1786_v47, %v382_v9  ;;  %v383_v14 = vmul.f32 0.015625, %v354_v10  ;;  %438 = vadd.xlane.f32.xlu1 %v437_v62  ;;  %441 = vadd.xlane.f32.xlu0 %v440_v11 }
 0x1a4   :  { %v357_v5 = vpop.xlane.xlu0 %356  ;;  %v443_v24 = vsel %vm324_vm2, %v413_v12, 0.0  ;;  %1341 = vmatprep.subr.bf16.mxu1 %v1367_v57 }
 0x1a5   :  { %v1876_v18 = vsub.f32 %v1791_v16, %v383_v14  ;;  %v384_v63 = vmul.f32 0.015625, %v357_v5  ;;  %v414_v21 = vmul.f32 %v1873_v13, %v1873_v13 }
 0x1a6   :  { %v360_v22 = vpop.xlane.xlu1 %359  ;;  %1342 = vmatpush3.bf16.msra.mxu1 %v1367_v57 }
 0x1a7   :  { %v1882_v6 = vsub.f32 %v1794_v17, %v384_v63  ;;  %v385_v25 = vmul.f32 0.015625, %v360_v22  ;;  %444 = vadd.xlane.f32.xlu1 %v443_v24  ;;  %v446_v47 = vsel %vm324_vm2, %v414_v21, 0.0  ;;  %v415_v3 = vmul.f32 %v1876_v18, %v1876_v18  ;;  %1343 = vmatprep.subr.bf16.mxu1 %v1368_v58 }
 0x1a8   :  { %447 = vadd.xlane.f32.xlu0 %v446_v47  ;;  %v363_v16 = vpop.xlane.xlu0 %362 }
 0x1a9   :  { %v1888_v31 = vsub.f32 %v1799_v20, %v385_v25  ;;  %v386_v19 = vmul.f32 0.015625, %v363_v16  ;;  %v416_v36 = vmul.f32 %v1882_v6, %v1882_v6  ;;  %v449_v17 = vsel %vm324_vm2, %v415_v3, 0.0  ;;  %v1936_v16 = vld [vmem:[%s2370_s3] ss:$0 sm:$0xff] }
 0x1aa   :  { %v366_v27 = vpop.xlane.xlu1 %365  ;;  %1344 = vmatpush3.bf16.msra.mxu1 %v1368_v58 }
 0x1ab   :  { %v1894_v39 = vsub.f32 %v1806_v59, %v386_v19  ;;  %v387_v15 = vmul.f32 0.015625, %v366_v27  ;;  %450 = vadd.xlane.f32.xlu1 %v449_v17  ;;  %v452_v28 = vsel %vm324_vm2, %v416_v36, 0.0  ;;  %v417_v23 = vmul.f32 %v1888_v31, %v1888_v31 }
 0x1ac   :  { %453 = vadd.xlane.f32.xlu0 %v452_v28  ;;  %v369_v20 = vpop.xlane.xlu0 %368 }
 0x1ad   :  { %v1900_v45 = vsub.f32 %v1811_v26, %v387_v15  ;;  %v388_v32 = vmul.f32 0.015625, %v369_v20  ;;  %v418_v46 = vmul.f32 %v1894_v39, %v1894_v39  ;;  %v455_v59 = vsel %vm324_vm2, %v417_v23, 0.0 }
 0x1ae   :  { %v372_v48 = vpop.xlane.xlu1 %371 }
 0x1af   :  { %v1906_v35 = vsub.f32 %v1814_v29, %v388_v32  ;;  %v389_v33 = vmul.f32 0.015625, %v372_v48  ;;  %456 = vadd.xlane.f32.xlu1 %v455_v59  ;;  %v458_v37 = vsel %vm324_vm2, %v418_v46, 0.0  ;;  %v419_v52 = vmul.f32 %v1900_v45, %v1900_v45  ;;  %v1943_v48 = vld [vmem:[%s2371_s4] ss:$0 sm:$0xff] }
 0x1b0   :  { %459 = vadd.xlane.f32.xlu0 %v458_v37 }
 0x1b1   :  { %v1912_v26 = vsub.f32 %v1819_v34, %v389_v33  ;;  %v420_v53 = vmul.f32 %v1906_v35, %v1906_v35  ;;  %v461_v38 = vsel %vm324_vm2, %v419_v52, 0.0 }
 0x1b3   :  { %462 = vadd.xlane.f32.xlu1 %v461_v38  ;;  %v464_v29 = vsel %vm324_vm2, %v420_v53, 0.0  ;;  %v421_v54 = vmul.f32 %v1912_v26, %v1912_v26 }
 0x1b4   :  { %465 = vadd.xlane.f32.xlu0 %v464_v29 }
 0x1b5   :  { %v467_v34 = vsel %vm324_vm2, %v421_v54, 0.0 }
 0x1b7   :  { %468 = vadd.xlane.f32.xlu1 %v467_v34 }
 0x224   :  { %v424_v0 = vpop.xlane.xlu0 %423 }
 0x225   :  { %v470_v1 = vmul.f32 0.015625, %v424_v0 }
 0x227   :  { %v486_v2 = vadd.f32 1e-05, %v470_v1 }
 0x228   :  { %v427_v4 = vpop.xlane.xlu1 %426  ;;  %v430_v44 = vpop.xlane.xlu0 %429 }
 0x229   :  { %1433 = vrsqrt.f32 %v486_v2  ;;  %v471_v7 = vmul.f32 0.015625, %v427_v4  ;;  %v472_v8 = vmul.f32 0.015625, %v430_v44 }
 0x22b   :  { %v487_v50 = vadd.f32 1e-05, %v471_v7  ;;  %v488_v42 = vadd.f32 1e-05, %v472_v8 }
 0x22c   :  { %v433_v9 = vpop.xlane.xlu1 %432  ;;  %v436_v10 = vpop.xlane.xlu0 %435 }
 0x22d   :  { %1435 = vrsqrt.f32 %v487_v50  ;;  %v473_v62 = vmul.f32 0.015625, %v433_v9  ;;  %v474_v11 = vmul.f32 0.015625, %v436_v10 }
 0x22e   :  { %1437 = vrsqrt.f32 %v488_v42 }
 0x22f   :  { %v489_v12 = vadd.f32 1e-05, %v473_v62  ;;  %v490_v14 = vadd.f32 1e-05, %v474_v11 }
 0x230   :  { %v439_v5 = vpop.xlane.xlu1 %438  ;;  %v442_v63 = vpop.xlane.xlu0 %441 }
 0x231   :  { %1439 = vrsqrt.f32 %v489_v12  ;;  %v475_v21 = vmul.f32 0.015625, %v439_v5  ;;  %v476_v22 = vmul.f32 0.015625, %v442_v63 }
 0x232   :  { %1441 = vrsqrt.f32 %v490_v14 }
 0x233   :  { %v1434_v24 = vpop.eup %1433  ;;  %v491_v25 = vadd.f32 1e-05, %v475_v21  ;;  %v492_v47 = vadd.f32 1e-05, %v476_v22 }
 0x234   :  { %v445_v3 = vpop.xlane.xlu1 %444  ;;  %v518_v19 = vmul.f32 %v1434_v24, %v1829_v30 }
 0x235   :  { %1443 = vrsqrt.f32 %v491_v25  ;;  %v477_v36 = vmul.f32 0.015625, %v445_v3  ;;  %v448_v27 = vpop.xlane.xlu0 %447 }
 0x236   :  { %1445 = vrsqrt.f32 %v492_v47  ;;  %v478_v17 = vmul.f32 0.015625, %v448_v27  ;;  %v540_v23 = vmul.f32 %v1936_v16, %v518_v19 }
 0x237   :  { %v1436_v15 = vpop.eup %1435  ;;  %v493_v28 = vadd.f32 1e-05, %v477_v36 }
 0x238   :  { %v1438_v20 = vpop.eup %1437  ;;  %v494_v32 = vadd.f32 1e-05, %v478_v17  ;;  %v451_v46 = vpop.xlane.xlu1 %450  ;;  %v519_v59 = vmul.f32 %v1436_v15, %v1837_v51  ;;  %v562_v54 = vadd.f32 %v1943_v48, %v540_v23 }
 0x239   :  { %v520_v30 = vmul.f32 %v1438_v20, %v1826_v41  ;;  %1447 = vrsqrt.f32 %v493_v28  ;;  %v479_v33 = vmul.f32 0.015625, %v451_v46  ;;  %v454_v37 = vpop.xlane.xlu0 %453 }
 0x23a   :  { %1449 = vrsqrt.f32 %v494_v32  ;;  %v480_v52 = vmul.f32 0.015625, %v454_v37  ;;  %v541_v53 = vmul.f32 %v1936_v16, %v519_v59 }
 0x23b   :  { %v1440_v38 = vpop.eup %1439  ;;  %v495_v29 = vadd.f32 1e-05, %v479_v33  ;;  %v542_v41 = vmul.f32 %v1936_v16, %v520_v30 }
 0x23c   :  { %v1442_v43 = vpop.eup %1441  ;;  %v521_v34 = vmul.f32 %v1440_v38, %v1834_v49  ;;  %v496_v55 = vadd.f32 1e-05, %v480_v52  ;;  %v457_v57 = vpop.xlane.xlu1 %456  ;;  %v563_v51 = vadd.f32 %v1943_v48, %v541_v53 }
 0x23d   :  { %v522_v58 = vmul.f32 %v1442_v43, %v1847_v40  ;;  %1451 = vrsqrt.f32 %v495_v29  ;;  %v481_v0 = vmul.f32 0.015625, %v457_v57  ;;  %v460_v1 = vpop.xlane.xlu0 %459  ;;  %v564_v40 = vadd.f32 %v1943_v48, %v542_v41 }
 0x23e   :  { %1453 = vrsqrt.f32 %v496_v55  ;;  %v482_v2 = vmul.f32 0.015625, %v460_v1  ;;  %v586_v4 = vpack.c.bf16 %v563_v51, %v562_v54  ;;  %v543_v44 = vmul.f32 %v1936_v16, %v521_v34 }
 0x23f   :  { %v1444_v7 = vpop.eup %1443  ;;  %v497_v8 = vadd.f32 1e-05, %v481_v0  ;;  %v544_v49 = vmul.f32 %v1936_v16, %v522_v58 }
 0x240   :  { %v1446_v50 = vpop.eup %1445  ;;  %v523_v42 = vmul.f32 %v1444_v7, %v1852_v60  ;;  %v498_v9 = vadd.f32 1e-05, %v482_v2  ;;  %v463_v10 = vpop.xlane.xlu1 %462  ;;  %1345 = vmatprep.mubr.msk.bf16.mxu1 %vm324_vm2, %v586_v4  ;;  %v565_v62 = vadd.f32 %v1943_v48, %v543_v44 }
 0x241   :  { %v524_v11 = vmul.f32 %v1446_v50, %v1858_v56  ;;  %1455 = vrsqrt.f32 %v497_v8  ;;  %v483_v12 = vmul.f32 0.015625, %v463_v10  ;;  %v466_v14 = vpop.xlane.xlu0 %465  ;;  %v566_v24 = vadd.f32 %v1943_v48, %v544_v49 }
 0x242   :  { %1457 = vrsqrt.f32 %v498_v9  ;;  %v484_v5 = vmul.f32 0.015625, %v466_v14  ;;  %v587_v63 = vpack.c.bf16 %v565_v62, %v564_v40  ;;  %v545_v21 = vmul.f32 %v1936_v16, %v523_v42 }
 0x243   :  { %v1448_v22 = vpop.eup %1447  ;;  %v499_v60 = vadd.f32 1e-05, %v483_v12  ;;  %v546_v36 = vmul.f32 %v1936_v16, %v524_v11 }
 0x244   :  { %v1450_v25 = vpop.eup %1449  ;;  %v525_v47 = vmul.f32 %v1448_v22, %v1864_v61  ;;  %v500_v3 = vadd.f32 1e-05, %v484_v5  ;;  %v469_v19 = vpop.xlane.xlu1 %468  ;;  %1346 = vmatmul.mubr.msk.bf16.vlgmr.msra.gmra.mrb[0].mxu1 %vm324_vm2, %v587_v63  ;;  %v567_v56 = vadd.f32 %v1943_v48, %v545_v21 }
 0x245   :  { %v526_v27 = vmul.f32 %v1450_v25, %v1873_v13  ;;  %1459 = vrsqrt.f32 %v499_v60  ;;  %v485_v17 = vmul.f32 0.015625, %v469_v19  ;;  %v568_v46 = vadd.f32 %v1943_v48, %v546_v36 }
 0x246   :  { %1461 = vrsqrt.f32 %v500_v3  ;;  %v588_v15 = vpack.c.bf16 %v567_v56, %v566_v24  ;;  %v547_v28 = vmul.f32 %v1936_v16, %v525_v47 }
 0x247   :  { %v1452_v23 = vpop.eup %1451  ;;  %v501_v20 = vadd.f32 1e-05, %v485_v17  ;;  %v548_v30 = vmul.f32 %v1936_v16, %v526_v27 }
 0x248   :  { %v1454_v32 = vpop.eup %1453  ;;  %v527_v61 = vmul.f32 %v1452_v23, %v1876_v18  ;;  %1349 = vmatprep.mubr.msk.bf16.mxu1 %vm324_vm2, %v588_v15  ;;  %v569_v59 = vadd.f32 %v1943_v48, %v547_v28 }
 0x249   :  { %v528_v13 = vmul.f32 %v1454_v32, %v1882_v6  ;;  %1463 = vrsqrt.f32 %v501_v20  ;;  %v570_v18 = vadd.f32 %v1943_v48, %v548_v30 }
 0x24a   :  { %v589_v33 = vpack.c.bf16 %v569_v59, %v568_v46  ;;  %v549_v37 = vmul.f32 %v1936_v16, %v527_v61 }
 0x24b   :  { %v1456_v52 = vpop.eup %1455  ;;  %v550_v54 = vmul.f32 %v1936_v16, %v528_v13 }
 0x24c   :  { %v1458_v53 = vpop.eup %1457  ;;  %v529_v38 = vmul.f32 %v1456_v52, %v1888_v31  ;;  %1350 = vmatmul.mubr.msk.bf16.gmra.mrb[4].mxu1 %vm324_vm2, %v589_v33  ;;  %v571_v29 = vadd.f32 %v1943_v48, %v549_v37 }
 0x24d   :  { %v530_v43 = vmul.f32 %v1458_v53, %v1894_v39  ;;  %v572_v31 = vadd.f32 %v1943_v48, %v550_v54 }
 0x24e   :  { %v590_v34 = vpack.c.bf16 %v571_v29, %v570_v18  ;;  %v551_v6 = vmul.f32 %v1936_v16, %v529_v38 }
 0x24f   :  { %v1460_v55 = vpop.eup %1459  ;;  %v552_v58 = vmul.f32 %v1936_v16, %v530_v43 }
 0x250   :  { %v1462_v57 = vpop.eup %1461  ;;  %v531_v51 = vmul.f32 %v1460_v55, %v1900_v45  ;;  %1353 = vmatprep.mubr.msk.bf16.mxu1 %vm324_vm2, %v590_v34  ;;  %v573_v41 = vadd.f32 %v1943_v48, %v551_v6 }
 0x251   :  { %v532_v0 = vmul.f32 %v1462_v57, %v1906_v35  ;;  %v574_v45 = vadd.f32 %v1943_v48, %v552_v58 }
 0x252   :  { %v591_v1 = vpack.c.bf16 %v573_v41, %v572_v31  ;;  %v553_v39 = vmul.f32 %v1936_v16, %v531_v51 }
 0x253   :  { %v1464_v2 = vpop.eup %1463  ;;  %v554_v7 = vmul.f32 %v1936_v16, %v532_v0 }
 0x254   :  { %v533_v4 = vmul.f32 %v1464_v2, %v1912_v26  ;;  %1354 = vmatmul.mubr.msk.bf16.gmra.mrb[8].mxu1 %vm324_vm2, %v591_v1  ;;  %v575_v44 = vadd.f32 %v1943_v48, %v553_v39  ;;  %v2002_v26 = vld [vmem:[%s2372_s6] ss:$0 sm:$0xff] }
 0x255   :  { %v576_v35 = vadd.f32 %v1943_v48, %v554_v7 }
 0x256   :  { %v592_v8 = vpack.c.bf16 %v575_v44, %v574_v45  ;;  %v555_v49 = vmul.f32 %v1936_v16, %v533_v4 }
 0x258   :  { %1357 = vmatprep.mubr.msk.bf16.mxu1 %vm324_vm2, %v592_v8  ;;  %v577_v50 = vadd.f32 %v1943_v48, %v555_v49 }
 0x25a   :  { %v593_v42 = vpack.c.bf16 %v577_v50, %v576_v35 }
 0x25c   :  { %1358 = vmatmul.mubr.msk.bf16.gmra.mrb[12].mxu1 %vm324_vm2, %v593_v42 }
 0x317   :  { %v1347_v9 = vpop.f32.mrb[0].mxu1 }
 0x318   :  { %v2005_v10 = vadd.f32 %v1347_v9, %v2002_v26  ;;  %v683_v40 = vpop.f32.mrb[1].mxu1 }
 0x319   :  { %v2008_v16 = vadd.f32 %v2002_v26, %v683_v40  ;;  %v1348_v62 = vpop.f32.mrb[2].mxu1 }
 0x31a   :  { %v1244_v11 = vmul.f32 -1.442695, %v2005_v10  ;;  %v2012_v48 = vadd.f32 %v1348_v62, %v2002_v26  ;;  %v686_v12 = vpop.f32.mrb[3].mxu1 }
 0x31b   :  { %v1242_v14 = vmul.f32 -1.442695, %v2008_v16  ;;  %v2016_v5 = vadd.f32 %v2002_v26, %v686_v12 }
 0x31c   :  { %1465 = vpow2.f32 %v1244_v11  ;;  %v1245_v63 = vmul.f32 -1.442695, %v2012_v48 }
 0x31d   :  { %1467 = vpow2.f32 %v1242_v14  ;;  %v1243_v21 = vmul.f32 -1.442695, %v2016_v5 }
 0x31e   :  { %1469 = vpow2.f32 %v1245_v63 }
 0x31f   :  { %1471 = vpow2.f32 %v1243_v21  ;;  %v1351_v22 = vpop.f32.mrb[4].mxu1 }
 0x320   :  { %v2021_v60 = vadd.f32 %v1351_v22, %v2002_v26  ;;  %v699_v24 = vpop.f32.mrb[5].mxu1 }
 0x321   :  { %v2024_v25 = vadd.f32 %v2002_v26, %v699_v24  ;;  %v1352_v47 = vpop.f32.mrb[6].mxu1 }
 0x322   :  { %v1248_v3 = vmul.f32 -1.442695, %v2021_v60  ;;  %v2028_v19 = vadd.f32 %v1352_v47, %v2002_v26  ;;  %v702_v56 = vpop.f32.mrb[7].mxu1 }
 0x323   :  { %v1246_v36 = vmul.f32 -1.442695, %v2024_v25  ;;  %v2032_v27 = vadd.f32 %v2002_v26, %v702_v56 }
 0x324   :  { %1473 = vpow2.f32 %v1248_v3  ;;  %v1249_v17 = vmul.f32 -1.442695, %v2028_v19 }
 0x325   :  { %1475 = vpow2.f32 %v1246_v36  ;;  %v1247_v15 = vmul.f32 -1.442695, %v2032_v27 }
 0x326   :  { %v1466_v28 = vpop.eup %1465  ;;  %1477 = vpow2.f32 %v1249_v17 }
 0x327   :  { %v1468_v23 = vpop.eup %1467  ;;  %v796_v20 = vadd.f32 1.0, %v1466_v28  ;;  %1479 = vpow2.f32 %v1247_v15  ;;  %v1355_v32 = vpop.f32.mrb[8].mxu1 }
 0x328   :  { %v1470_v61 = vpop.eup %1469  ;;  %v794_v46 = vadd.f32 1.0, %v1468_v23  ;;  %v2037_v59 = vadd.f32 %v1355_v32, %v2002_v26  ;;  %v715_v30 = vpop.f32.mrb[9].mxu1 }
 0x329   :  { %v1472_v13 = vpop.eup %1471  ;;  %1481 = vrcp.f32 %v796_v20  ;;  %v797_v33 = vadd.f32 1.0, %v1470_v61  ;;  %v2040_v37 = vadd.f32 %v2002_v26, %v715_v30  ;;  %v1356_v52 = vpop.f32.mrb[10].mxu1 }
 0x32a   :  { %1483 = vrcp.f32 %v794_v46  ;;  %v795_v53 = vadd.f32 1.0, %v1472_v13  ;;  %v1252_v38 = vmul.f32 -1.442695, %v2037_v59  ;;  %v2044_v18 = vadd.f32 %v1356_v52, %v2002_v26  ;;  %v718_v29 = vpop.f32.mrb[11].mxu1 }
 0x32b   :  { %1485 = vrcp.f32 %v797_v33  ;;  %v1250_v54 = vmul.f32 -1.442695, %v2040_v37  ;;  %v2048_v43 = vadd.f32 %v2002_v26, %v718_v29 }
 0x32c   :  { %1487 = vrcp.f32 %v795_v53  ;;  %v1253_v34 = vmul.f32 -1.442695, %v2044_v18 }
 0x32d   :  { %1489 = vpow2.f32 %v1252_v38  ;;  %v1251_v6 = vmul.f32 -1.442695, %v2048_v43 }
 0x32e   :  { %v1474_v55 = vpop.eup %1473  ;;  %1491 = vpow2.f32 %v1250_v54 }
 0x32f   :  { %v1476_v57 = vpop.eup %1475  ;;  %v800_v51 = vadd.f32 1.0, %v1474_v55  ;;  %1493 = vpow2.f32 %v1253_v34  ;;  %v1359_v31 = vpop.f32.mrb[12].mxu1 }
 0x330   :  { %v1478_v41 = vpop.eup %1477  ;;  %v798_v58 = vadd.f32 1.0, %v1476_v57  ;;  %1495 = vpow2.f32 %v1251_v6  ;;  %v2053_v0 = vadd.f32 %v1359_v31, %v2002_v26  ;;  %v731_v1 = vpop.f32.mrb[13].mxu1 }
 0x331   :  { %v1480_v39 = vpop.eup %1479  ;;  %1497 = vrcp.f32 %v800_v51  ;;  %v801_v2 = vadd.f32 1.0, %v1478_v41  ;;  %v2056_v4 = vadd.f32 %v2002_v26, %v731_v1  ;;  %v1360_v45 = vpop.f32.mrb[14].mxu1 }
 0x332   :  { %1499 = vrcp.f32 %v798_v58  ;;  %v799_v44 = vadd.f32 1.0, %v1480_v39  ;;  %v1256_v7 = vmul.f32 -1.442695, %v2053_v0  ;;  %v2060_v8 = vadd.f32 %v1360_v45, %v2002_v26  ;;  %v734_v49 = vpop.f32.mrb[15].mxu1 }
 0x333   :  { %v1482_v35 = vpop.eup %1481  ;;  %1501 = vrcp.f32 %v801_v2  ;;  %v1254_v50 = vmul.f32 -1.442695, %v2056_v4  ;;  %v2064_v42 = vadd.f32 %v2002_v26, %v734_v49 }
 0x334   :  { %v1484_v9 = vpop.eup %1483  ;;  %1503 = vrcp.f32 %v799_v44  ;;  %v1257_v40 = vmul.f32 -1.442695, %v2060_v8  ;;  %v2068_v62 = vmul.f32 %v1482_v35, %v2005_v10 }
 0x335   :  { %v1486_v11 = vpop.eup %1485  ;;  %1505 = vpow2.f32 %v1256_v7  ;;  %v1255_v12 = vmul.f32 -1.442695, %v2064_v42  ;;  %v2077_v21 = vmul.f32 %v1484_v9, %v2008_v16 }
 0x336   :  { %v1488_v14 = vpop.eup %1487  ;;  %1507 = vpow2.f32 %v1254_v50  ;;  %v867_v63 = vsel %vm860_vm3, %v2068_v62, 0.0  ;;  %v2074_v26 = vmul.f32 %v1486_v11, %v2012_v48 }
 0x337   :  { %v1490_v22 = vpop.eup %1489  ;;  %1509 = vpow2.f32 %v1257_v40  ;;  %868 = vadd.xlane.f32.xlu0 %v867_v63  ;;  %v2082_v3 = vmul.f32 %v1488_v14, %v2016_v5  ;;  %v861_v16 = vsel %vm860_vm3, %v2077_v21, 0.0 }
 0x338   :  { %v1492_v10 = vpop.eup %1491  ;;  %v804_v24 = vadd.f32 1.0, %v1490_v22  ;;  %1511 = vpow2.f32 %v1255_v12  ;;  %v870_v47 = vsel %vm860_vm3, %v2074_v26, 0.0 }
 0x339   :  { %v1494_v56 = vpop.eup %1493  ;;  %v802_v36 = vadd.f32 1.0, %v1492_v10  ;;  %871 = vadd.xlane.f32.xlu1 %v870_v47  ;;  %v864_v20 = vsel %vm860_vm3, %v2082_v3, 0.0 }
 0x33a   :  { %v1496_v48 = vpop.eup %1495  ;;  %1513 = vrcp.f32 %v804_v24  ;;  %v805_v17 = vadd.f32 1.0, %v1494_v56 }
 0x33b   :  { %v1498_v15 = vpop.eup %1497  ;;  %1515 = vrcp.f32 %v802_v36  ;;  %v803_v28 = vadd.f32 1.0, %v1496_v48  ;;  %862 = vadd.xlane.f32.xlu0 %v861_v16 }
 0x33c   :  { %v1500_v23 = vpop.eup %1499  ;;  %1517 = vrcp.f32 %v805_v17  ;;  %v2089_v5 = vmul.f32 %v1498_v15, %v2021_v60 }
 0x33d   :  { %v1502_v32 = vpop.eup %1501  ;;  %1519 = vrcp.f32 %v803_v28  ;;  %865 = vadd.xlane.f32.xlu1 %v864_v20  ;;  %v2097_v13 = vmul.f32 %v1500_v23, %v2024_v25 }
 0x33e   :  { %v1504_v61 = vpop.eup %1503  ;;  %v879_v46 = vsel %vm860_vm3, %v2089_v5, 0.0  ;;  %v2094_v30 = vmul.f32 %v1502_v32, %v2028_v19 }
 0x33f   :  { %v1506_v33 = vpop.eup %1505  ;;  %880 = vadd.xlane.f32.xlu0 %v879_v46  ;;  %v2102_v38 = vmul.f32 %v1504_v61, %v2032_v27  ;;  %v873_v25 = vsel %vm860_vm3, %v2097_v13, 0.0 }
 0x340   :  { %v1508_v52 = vpop.eup %1507  ;;  %v808_v53 = vadd.f32 1.0, %v1506_v33  ;;  %v882_v60 = vsel %vm860_vm3, %v2094_v30, 0.0 }
 0x341   :  { %v1510_v29 = vpop.eup %1509  ;;  %v806_v54 = vadd.f32 1.0, %v1508_v52  ;;  %883 = vadd.xlane.f32.xlu1 %v882_v60  ;;  %v876_v57 = vsel %vm860_vm3, %v2102_v38, 0.0 }
 0x342   :  { %v1512_v34 = vpop.eup %1511  ;;  %1521 = vrcp.f32 %v808_v53  ;;  %v809_v19 = vadd.f32 1.0, %v1510_v29 }
 0x343   :  { %1523 = vrcp.f32 %v806_v54  ;;  %v807_v6 = vadd.f32 1.0, %v1512_v34  ;;  %874 = vadd.xlane.f32.xlu0 %v873_v25 }
 0x344   :  { %v1514_v55 = vpop.eup %1513  ;;  %1525 = vrcp.f32 %v809_v19 }
 0x345   :  { %v1516_v51 = vpop.eup %1515  ;;  %1527 = vrcp.f32 %v807_v6  ;;  %877 = vadd.xlane.f32.xlu1 %v876_v57  ;;  %v2109_v27 = vmul.f32 %v1514_v55, %v2037_v59 }
 0x346   :  { %v1518_v31 = vpop.eup %1517  ;;  %v2117_v39 = vmul.f32 %v1516_v51, %v2040_v37 }
 0x347   :  { %v1520_v41 = vpop.eup %1519  ;;  %v891_v58 = vsel %vm860_vm3, %v2109_v27, 0.0  ;;  %v2114_v1 = vmul.f32 %v1518_v31, %v2044_v18 }
 0x348   :  { %892 = vadd.xlane.f32.xlu0 %v891_v58  ;;  %v2122_v45 = vmul.f32 %v1520_v41, %v2048_v43  ;;  %v885_v59 = vsel %vm860_vm3, %v2117_v39, 0.0 }
 0x349   :  { %v894_v2 = vsel %vm860_vm3, %v2114_v1, 0.0 }
 0x34a   :  { %895 = vadd.xlane.f32.xlu1 %v894_v2  ;;  %v888_v18 = vsel %vm860_vm3, %v2122_v45, 0.0 }
 0x34c   :  { %v1522_v44 = vpop.eup %1521  ;;  %886 = vadd.xlane.f32.xlu0 %v885_v59 }
 0x34d   :  { %v1524_v7 = vpop.eup %1523  ;;  %v2137_v9 = vmul.f32 %v1522_v44, %v2053_v0 }
 0x34e   :  { %v1526_v49 = vpop.eup %1525  ;;  %889 = vadd.xlane.f32.xlu1 %v888_v18  ;;  %v2129_v37 = vmul.f32 %v1524_v7, %v2056_v4 }
 0x34f   :  { %v1528_v35 = vpop.eup %1527  ;;  %v2142_v11 = vmul.f32 %v1526_v49, %v2060_v8  ;;  %v903_v4 = vsel %vm860_vm3, %v2137_v9, 0.0 }
 0x350   :  { %v897_v43 = vsel %vm860_vm3, %v2129_v37, 0.0  ;;  %v2134_v50 = vmul.f32 %v1528_v35, %v2064_v42 }
 0x351   :  { %898 = vadd.xlane.f32.xlu0 %v897_v43  ;;  %v906_v12 = vsel %vm860_vm3, %v2142_v11, 0.0 }
 0x352   :  { %v900_v40 = vsel %vm860_vm3, %v2134_v50, 0.0 }
 0x353   :  { %901 = vadd.xlane.f32.xlu1 %v900_v40 }
 0x355   :  { %904 = vadd.xlane.f32.xlu0 %v903_v4 }
 0x357   :  { %907 = vadd.xlane.f32.xlu1 %v906_v12 }
 0x3c4   :  { %v869_v42 = vpop.xlane.xlu0 %868 }
 0x3c5   :  { %v912_v14 = vmul.f32 0.03125, %v869_v42 }
 0x3c6   :  { %v872_v0 = vpop.xlane.xlu1 %871 }
 0x3c7   :  { %v2149_v63 = vsub.f32 %v2068_v62, %v912_v14  ;;  %v913_v22 = vmul.f32 0.03125, %v872_v0 }
 0x3c8   :  { %v863_v10 = vpop.xlane.xlu0 %862 }
 0x3c9   :  { %v2152_v8 = vsub.f32 %v2074_v26, %v913_v22  ;;  %v910_v24 = vmul.f32 0.03125, %v863_v10  ;;  %v944_v47 = vmul.f32 %v2149_v63, %v2149_v63 }
 0x3ca   :  { %v866_v56 = vpop.xlane.xlu1 %865 }
 0x3cb   :  { %v2157_v36 = vsub.f32 %v2077_v21, %v910_v24  ;;  %v911_v48 = vmul.f32 0.03125, %v866_v56  ;;  %v964_v17 = vsel %vm860_vm3, %v944_v47, 0.0  ;;  %v945_v62 = vmul.f32 %v2152_v8, %v2152_v8 }
 0x3cc   :  { %965 = vadd.xlane.f32.xlu0 %v964_v17  ;;  %v881_v16 = vpop.xlane.xlu0 %880 }
 0x3cd   :  { %v2163_v15 = vsub.f32 %v2082_v3, %v911_v48  ;;  %v916_v26 = vmul.f32 0.03125, %v881_v16  ;;  %v967_v28 = vsel %vm860_vm3, %v945_v62, 0.0  ;;  %v942_v23 = vmul.f32 %v2157_v36, %v2157_v36 }
 0x3ce   :  { %v884_v20 = vpop.xlane.xlu1 %883  ;;  %968 = vadd.xlane.f32.xlu1 %v967_v28 }
 0x3cf   :  { %v2169_v21 = vsub.f32 %v2089_v5, %v916_v26  ;;  %v917_v32 = vmul.f32 0.03125, %v884_v20  ;;  %v958_v61 = vsel %vm860_vm3, %v942_v23, 0.0  ;;  %v943_v46 = vmul.f32 %v2163_v15, %v2163_v15 }
 0x3d0   :  { %959 = vadd.xlane.f32.xlu0 %v958_v61  ;;  %v875_v3 = vpop.xlane.xlu0 %874 }
 0x3d1   :  { %v2175_v33 = vsub.f32 %v2094_v30, %v917_v32  ;;  %v914_v52 = vmul.f32 0.03125, %v875_v3  ;;  %v961_v53 = vsel %vm860_vm3, %v943_v46, 0.0  ;;  %v948_v60 = vmul.f32 %v2169_v21, %v2169_v21 }
 0x3d2   :  { %v878_v29 = vpop.xlane.xlu1 %877  ;;  %962 = vadd.xlane.f32.xlu1 %v961_v53 }
 0x3d3   :  { %v2181_v5 = vsub.f32 %v2097_v13, %v914_v52  ;;  %v915_v54 = vmul.f32 0.03125, %v878_v29  ;;  %v976_v34 = vsel %vm860_vm3, %v948_v60, 0.0  ;;  %v949_v19 = vmul.f32 %v2175_v33, %v2175_v33 }
 0x3d4   :  { %977 = vadd.xlane.f32.xlu0 %v976_v34 }
 0x3d5   :  { %v2187_v30 = vsub.f32 %v2102_v38, %v915_v54  ;;  %v893_v25 = vpop.xlane.xlu0 %892  ;;  %v979_v6 = vsel %vm860_vm3, %v949_v19, 0.0  ;;  %v946_v55 = vmul.f32 %v2181_v5, %v2181_v5 }
 0x3d6   :  { %v920_v57 = vmul.f32 0.03125, %v893_v25  ;;  %980 = vadd.xlane.f32.xlu1 %v979_v6 }
 0x3d7   :  { %v896_v13 = vpop.xlane.xlu1 %895  ;;  %v970_v51 = vsel %vm860_vm3, %v946_v55, 0.0  ;;  %v947_v31 = vmul.f32 %v2187_v30, %v2187_v30 }
 0x3d8   :  { %v2196_v41 = vsub.f32 %v2109_v27, %v920_v57  ;;  %v921_v58 = vmul.f32 0.03125, %v896_v13  ;;  %971 = vadd.xlane.f32.xlu0 %v970_v51 }
 0x3d9   :  { %v887_v38 = vpop.xlane.xlu0 %886  ;;  %v973_v2 = vsel %vm860_vm3, %v947_v31, 0.0 }
 0x3da   :  { %v2200_v59 = vsub.f32 %v2114_v1, %v921_v58  ;;  %v918_v44 = vmul.f32 0.03125, %v887_v38  ;;  %974 = vadd.xlane.f32.xlu1 %v973_v2  ;;  %v952_v7 = vmul.f32 %v2196_v41, %v2196_v41 }
 0x3db   :  { %v890_v18 = vpop.xlane.xlu1 %889 }
 0x3dc   :  { %v2205_v49 = vsub.f32 %v2117_v39, %v918_v44  ;;  %v919_v35 = vmul.f32 0.03125, %v890_v18  ;;  %v988_v27 = vsel %vm860_vm3, %v952_v7, 0.0  ;;  %v953_v43 = vmul.f32 %v2200_v59, %v2200_v59  ;;  %v2247_v7 = vld [vmem:[%s2373_s7] ss:$0 sm:$0xff] }
 0x3dd   :  { %989 = vadd.xlane.f32.xlu0 %v988_v27 }
 0x3de   :  { %v2211_v40 = vsub.f32 %v2122_v45, %v919_v35  ;;  %v899_v1 = vpop.xlane.xlu0 %898  ;;  %v991_v4 = vsel %vm860_vm3, %v953_v43, 0.0  ;;  %v950_v12 = vmul.f32 %v2205_v49, %v2205_v49 }
 0x3df   :  { %v922_v42 = vmul.f32 0.03125, %v899_v1  ;;  %992 = vadd.xlane.f32.xlu1 %v991_v4  ;;  %v2253_v1 = vld [vmem:[%s2374_s8] ss:$0 sm:$0xff] }
 0x3e0   :  { %v902_v39 = vpop.xlane.xlu1 %901  ;;  %v982_v14 = vsel %vm860_vm3, %v950_v12, 0.0  ;;  %v951_v0 = vmul.f32 %v2211_v40, %v2211_v40 }
 0x3e1   :  { %v2220_v22 = vsub.f32 %v2129_v37, %v922_v42  ;;  %v923_v10 = vmul.f32 0.03125, %v902_v39  ;;  %983 = vadd.xlane.f32.xlu0 %v982_v14 }
 0x3e2   :  { %v905_v45 = vpop.xlane.xlu0 %904  ;;  %v985_v24 = vsel %vm860_vm3, %v951_v0, 0.0 }
 0x3e3   :  { %v2224_v47 = vsub.f32 %v2134_v50, %v923_v10  ;;  %v924_v56 = vmul.f32 0.03125, %v905_v45  ;;  %986 = vadd.xlane.f32.xlu1 %v985_v24  ;;  %v954_v48 = vmul.f32 %v2220_v22, %v2220_v22 }
 0x3e4   :  { %v908_v17 = vpop.xlane.xlu1 %907 }
 0x3e5   :  { %v2229_v62 = vsub.f32 %v2137_v9, %v924_v56  ;;  %v925_v16 = vmul.f32 0.03125, %v908_v17  ;;  %v994_v37 = vsel %vm860_vm3, %v954_v48, 0.0  ;;  %v955_v26 = vmul.f32 %v2224_v47, %v2224_v47 }
 0x3e6   :  { %995 = vadd.xlane.f32.xlu0 %v994_v37 }
 0x3e7   :  { %v2235_v28 = vsub.f32 %v2142_v11, %v925_v16  ;;  %v997_v50 = vsel %vm860_vm3, %v955_v26, 0.0  ;;  %v956_v23 = vmul.f32 %v2229_v62, %v2229_v62 }
 0x3e8   :  { %998 = vadd.xlane.f32.xlu1 %v997_v50 }
 0x3e9   :  { %v1000_v20 = vsel %vm860_vm3, %v956_v23, 0.0  ;;  %v957_v9 = vmul.f32 %v2235_v28, %v2235_v28 }
 0x3ea   :  { %1001 = vadd.xlane.f32.xlu0 %v1000_v20 }
 0x3eb   :  { %v1003_v32 = vsel %vm860_vm3, %v957_v9, 0.0 }
 0x3ec   :  { %1004 = vadd.xlane.f32.xlu1 %v1003_v32 }
 0x459   :  { %v966_v61 = vpop.xlane.xlu0 %965 }
 0x45a   :  { %v1008_v46 = vmul.f32 0.03125, %v966_v61 }
 0x45b   :  { %v969_v3 = vpop.xlane.xlu1 %968 }
 0x45c   :  { %v1024_v11 = vadd.f32 1e-05, %v1008_v46  ;;  %v1009_v52 = vmul.f32 0.03125, %v969_v3 }
 0x45d   :  { %v960_v53 = vpop.xlane.xlu0 %959 }
 0x45e   :  { %1529 = vrsqrt.f32 %v1024_v11  ;;  %v1025_v60 = vadd.f32 1e-05, %v1009_v52  ;;  %v1006_v29 = vmul.f32 0.03125, %v960_v53 }
 0x45f   :  { %v963_v54 = vpop.xlane.xlu1 %962 }
 0x460   :  { %1531 = vrsqrt.f32 %v1025_v60  ;;  %v1022_v34 = vadd.f32 1e-05, %v1006_v29  ;;  %v1007_v19 = vmul.f32 0.03125, %v963_v54 }
 0x461   :  { %v978_v25 = vpop.xlane.xlu0 %977 }
 0x462   :  { %1533 = vrsqrt.f32 %v1022_v34  ;;  %v1023_v6 = vadd.f32 1e-05, %v1007_v19  ;;  %v1012_v55 = vmul.f32 0.03125, %v978_v25 }
 0x463   :  { %v981_v57 = vpop.xlane.xlu1 %980 }
 0x464   :  { %1535 = vrsqrt.f32 %v1023_v6  ;;  %v1028_v13 = vadd.f32 1e-05, %v1012_v55  ;;  %v1013_v51 = vmul.f32 0.03125, %v981_v57 }
 0x465   :  { %v972_v31 = vpop.xlane.xlu0 %971 }
 0x466   :  { %1537 = vrsqrt.f32 %v1028_v13  ;;  %v1029_v58 = vadd.f32 1e-05, %v1013_v51  ;;  %v1010_v38 = vmul.f32 0.03125, %v972_v31 }
 0x467   :  { %v975_v2 = vpop.xlane.xlu1 %974 }
 0x468   :  { %v1530_v44 = vpop.eup %1529  ;;  %1539 = vrsqrt.f32 %v1029_v58  ;;  %v1026_v18 = vadd.f32 1e-05, %v1010_v38  ;;  %v1011_v35 = vmul.f32 0.03125, %v975_v2 }
 0x469   :  { %v1056_v27 = vmul.f32 %v1530_v44, %v2149_v63 }
 0x46a   :  { %v1532_v43 = vpop.eup %1531  ;;  %1541 = vrsqrt.f32 %v1026_v18  ;;  %v1027_v4 = vadd.f32 1e-05, %v1011_v35  ;;  %v990_v12 = vpop.xlane.xlu0 %989 }
 0x46b   :  { %v1078_v42 = vmul.f32 %v2247_v7, %v1056_v27  ;;  %v1057_v39 = vmul.f32 %v1532_v43, %v2152_v8  ;;  %v1016_v14 = vmul.f32 0.03125, %v990_v12 }
 0x46c   :  { %v1534_v0 = vpop.eup %1533  ;;  %1543 = vrsqrt.f32 %v1027_v4  ;;  %v993_v10 = vpop.xlane.xlu1 %992 }
 0x46d   :  { %v1100_v45 = vadd.f32 %v2253_v1, %v1078_v42  ;;  %v1079_v63 = vmul.f32 %v2247_v7, %v1057_v39  ;;  %v1054_v24 = vmul.f32 %v1534_v0, %v2157_v36  ;;  %v1032_v56 = vadd.f32 1e-05, %v1016_v14 }
 0x46e   :  { %v1536_v48 = vpop.eup %1535  ;;  %v1017_v17 = vmul.f32 0.03125, %v993_v10  ;;  %v984_v16 = vpop.xlane.xlu0 %983 }
 0x46f   :  { %v1278_v37 = vpack.c.bf16 %v1100_v45, %v1100_v45  ;;  %v1101_v26 = vadd.f32 %v2253_v1, %v1079_v63  ;;  %v1076_v8 = vmul.f32 %v2247_v7, %v1054_v24  ;;  %v1055_v50 = vmul.f32 %v1536_v48, %v2163_v15 }
 0x470   :  { %v1538_v23 = vpop.eup %1537  ;;  %1545 = vrsqrt.f32 %v1032_v56  ;;  %v1033_v20 = vadd.f32 1e-05, %v1017_v17  ;;  %v1014_v9 = vmul.f32 0.03125, %v984_v16  ;;  %v987_v32 = vpop.xlane.xlu1 %986 }
 0x471   :  { %1181 = vst.msk [vmem:[%s2375_s9 + $0x8] sm:$0xf] %vm1178_vm4, %v1278_v37  ;;  %v1279_v36 = vpack.c.bf16 %v1101_v26, %v1101_v26  ;;  %v1098_v61 = vadd.f32 %v2253_v1, %v1076_v8  ;;  %v1077_v46 = vmul.f32 %v2247_v7, %v1055_v50  ;;  %v1060_v3 = vmul.f32 %v1538_v23, %v2169_v21 }
 0x472   :  { %v1540_v11 = vpop.eup %1539  ;;  %1547 = vrsqrt.f32 %v1033_v20  ;;  %v1030_v15 = vadd.f32 1e-05, %v1014_v9  ;;  %v1015_v52 = vmul.f32 0.03125, %v987_v32 }
 0x473   :  { %1182 = vst.msk [vmem:[%s2375_s9 + $0xc] sm:$0xf] %vm1178_vm4, %v1279_v36  ;;  %v1276_v53 = vpack.c.bf16 %v1098_v61, %v1098_v61  ;;  %v1099_v60 = vadd.f32 %v2253_v1, %v1077_v46  ;;  %v1082_v29 = vmul.f32 %v2247_v7, %v1060_v3  ;;  %v1061_v54 = vmul.f32 %v1540_v11, %v2175_v33  ;;  %v996_v34 = vpop.xlane.xlu0 %995 }
 0x474   :  { %v1542_v19 = vpop.eup %1541  ;;  %1549 = vrsqrt.f32 %v1030_v15  ;;  %v1031_v21 = vadd.f32 1e-05, %v1015_v52  ;;  %v1018_v25 = vmul.f32 0.03125, %v996_v34 }
 0x475   :  { %1179 = vst.msk [vmem:[%s2375_s9] sm:$0xf] %vm1178_vm4, %v1276_v53  ;;  %v1277_v6 = vpack.c.bf16 %v1099_v60, %v1099_v60  ;;  %v1104_v55 = vadd.f32 %v2253_v1, %v1082_v29  ;;  %v1083_v57 = vmul.f32 %v2247_v7, %v1061_v54  ;;  %v1058_v13 = vmul.f32 %v1542_v19, %v2181_v5  ;;  %v999_v51 = vpop.xlane.xlu1 %998 }
 0x476   :  { %v1544_v31 = vpop.eup %1543  ;;  %1551 = vrsqrt.f32 %v1031_v21  ;;  %v1034_v33 = vadd.f32 1e-05, %v1018_v25  ;;  %v1019_v58 = vmul.f32 0.03125, %v999_v51 }
 0x477   :  { %1180 = vst.msk [vmem:[%s2375_s9 + $0x4] sm:$0xf] %vm1178_vm4, %v1277_v6  ;;  %v1282_v38 = vpack.c.bf16 %v1104_v55, %v1104_v55  ;;  %v1105_v2 = vadd.f32 %v2253_v1, %v1083_v57  ;;  %v1080_v44 = vmul.f32 %v2247_v7, %v1058_v13  ;;  %v1059_v18 = vmul.f32 %v1544_v31, %v2187_v30  ;;  %v1002_v35 = vpop.xlane.xlu0 %1001 }
 0x478   :  { %1553 = vrsqrt.f32 %v1034_v33  ;;  %v1035_v5 = vadd.f32 1e-05, %v1019_v58  ;;  %v1020_v27 = vmul.f32 0.03125, %v1002_v35 }
 0x479   :  { %1185 = vst.msk [vmem:[%s2375_s9 + $0x18] sm:$0xf] %vm1178_vm4, %v1282_v38  ;;  %v1283_v43 = vpack.c.bf16 %v1105_v2, %v1105_v2  ;;  %v1102_v4 = vadd.f32 %v2253_v1, %v1080_v44  ;;  %v1081_v12 = vmul.f32 %v2247_v7, %v1059_v18  ;;  %v1005_v42 = vpop.xlane.xlu1 %1004 }
 0x47a   :  { %v1546_v39 = vpop.eup %1545  ;;  %1555 = vrsqrt.f32 %v1035_v5  ;;  %v1036_v14 = vadd.f32 1e-05, %v1020_v27  ;;  %v1021_v0 = vmul.f32 0.03125, %v1005_v42 }
 0x47b   :  { %1186 = vst.msk [vmem:[%s2375_s9 + $0x1c] sm:$0xf] %vm1178_vm4, %v1283_v43  ;;  %v1280_v30 = vpack.c.bf16 %v1102_v4, %v1102_v4  ;;  %v1103_v10 = vadd.f32 %v2253_v1, %v1081_v12  ;;  %v1064_v45 = vmul.f32 %v1546_v39, %v2196_v41 }
 0x47c   :  { %v1548_v63 = vpop.eup %1547  ;;  %1557 = vrsqrt.f32 %v1036_v14  ;;  %v1037_v24 = vadd.f32 1e-05, %v1021_v0 }
 0x47d   :  { %1183 = vst.msk [vmem:[%s2375_s9 + $0x10] sm:$0xf] %vm1178_vm4, %v1280_v30  ;;  %v1281_v56 = vpack.c.bf16 %v1103_v10, %v1103_v10  ;;  %v1086_v48 = vmul.f32 %v2247_v7, %v1064_v45  ;;  %v1065_v17 = vmul.f32 %v1548_v63, %v2200_v59 }
 0x47e   :  { %v1550_v16 = vpop.eup %1549  ;;  %1559 = vrsqrt.f32 %v1037_v24 }
 0x47f   :  { %1184 = vst.msk [vmem:[%s2375_s9 + $0x14] sm:$0xf] %vm1178_vm4, %v1281_v56  ;;  %v1108_v41 = vadd.f32 %v2253_v1, %v1086_v48  ;;  %v1087_v37 = vmul.f32 %v2247_v7, %v1065_v17  ;;  %v1062_v26 = vmul.f32 %v1550_v16, %v2205_v49 }
 0x480   :  { %v1552_v8 = vpop.eup %1551 }
 0x481   :  { %v1286_v50 = vpack.c.bf16 %v1108_v41, %v1108_v41  ;;  %v1109_v23 = vadd.f32 %v2253_v1, %v1087_v37  ;;  %v1084_v20 = vmul.f32 %v2247_v7, %v1062_v26  ;;  %v1063_v59 = vmul.f32 %v1552_v8, %v2211_v40 }
 0x482   :  { %v1554_v9 = vpop.eup %1553 }
 0x483   :  { %1189 = vst.msk [vmem:[%s2375_s9 + $0x28] sm:$0xf] %vm1178_vm4, %v1286_v50  ;;  %v1287_v32 = vpack.c.bf16 %v1109_v23, %v1109_v23  ;;  %v1106_v36 = vadd.f32 %v2253_v1, %v1084_v20  ;;  %v1085_v61 = vmul.f32 %v2247_v7, %v1063_v59  ;;  %v1066_v49 = vmul.f32 %v1554_v9, %v2220_v22 }
 0x484   :  { %v1556_v46 = vpop.eup %1555 }
 0x485   :  { %1190 = vst.msk [vmem:[%s2375_s9 + $0x2c] sm:$0xf] %vm1178_vm4, %v1287_v32  ;;  %v1284_v40 = vpack.c.bf16 %v1106_v36, %v1106_v36  ;;  %v1107_v3 = vadd.f32 %v2253_v1, %v1085_v61  ;;  %v1088_v11 = vmul.f32 %v2247_v7, %v1066_v49  ;;  %v1067_v15 = vmul.f32 %v1556_v46, %v2224_v47 }
 0x486   :  { %v1558_v52 = vpop.eup %1557 }
 0x487   :  { %1187 = vst.msk [vmem:[%s2375_s9 + $0x20] sm:$0xf] %vm1178_vm4, %v1284_v40  ;;  %v1285_v22 = vpack.c.bf16 %v1107_v3, %v1107_v3  ;;  %v1110_v53 = vadd.f32 %v2253_v1, %v1088_v11  ;;  %v1089_v60 = vmul.f32 %v2247_v7, %v1067_v15  ;;  %v1068_v29 = vmul.f32 %v1558_v52, %v2229_v62 }
 0x488   :  { %v1560_v54 = vpop.eup %1559 }
 0x489   :  { %1188 = vst.msk [vmem:[%s2375_s9 + $0x24] sm:$0xf] %vm1178_vm4, %v1285_v22  ;;  %v1288_v47 = vpack.c.bf16 %v1110_v53, %v1110_v53  ;;  %v1111_v34 = vadd.f32 %v2253_v1, %v1089_v60  ;;  %v1090_v19 = vmul.f32 %v2247_v7, %v1068_v29  ;;  %v1069_v21 = vmul.f32 %v1560_v54, %v2235_v28 }
 0x48b   :  { %1191 = vst.msk [vmem:[%s2375_s9 + $0x30] sm:$0xf] %vm1178_vm4, %v1288_v47  ;;  %v1289_v25 = vpack.c.bf16 %v1111_v34, %v1111_v34  ;;  %v1112_v62 = vadd.f32 %v2253_v1, %v1090_v19  ;;  %v1091_v6 = vmul.f32 %v2247_v7, %v1069_v21 }
 0x48d   :  { %1192 = vst.msk [vmem:[%s2375_s9 + $0x34] sm:$0xf] %vm1178_vm4, %v1289_v25  ;;  %v1290_v55 = vpack.c.bf16 %v1112_v62, %v1112_v62  ;;  %v1113_v57 = vadd.f32 %v2253_v1, %v1091_v6 }
 0x48f   :  { %1193 = vst.msk [vmem:[%s2375_s9 + $0x38] sm:$0xf] %vm1178_vm4, %v1290_v55  ;;  %v1291_v28 = vpack.c.bf16 %v1113_v57, %v1113_v57 }
 0x491   :  { %1194 = vst.msk [vmem:[%s2375_s9 + $0x3c] sm:$0xf] %vm1178_vm4, %v1291_v28 }

</bundles_post_ra>
